<compile_context>
chip_gen: v7x
topology: tpu7x:2x2x1
jax: 0.10.0
libtpu: 0.0.40
codegen_flags: <defaults>
</compile_context>

<pallas_src>
import math

import numpy as np
import jax
import jax.numpy as jnp
from jax.experimental import pallas as pl
from jax.experimental.pallas import tpu as pltpu


def _round_up(x, m):
    return ((x + m - 1) // m) * m


# ----------------------------------------------------------------------------
# Resample 16 kHz -> 48 kHz : 3-phase, 15-tap sinc FIR on the VPU (no MXU)
# ----------------------------------------------------------------------------
def _sinc_resample_taps(orig_freq, new_freq, lowpass_filter_width=6,
                        rolloff=0.99):
    """torchaudio.functional.resample (sinc_interp_hann) polyphase taps."""
    gcd = math.gcd(orig_freq, new_freq)
    orig = orig_freq // gcd
    new = new_freq // gcd
    base_freq = min(orig, new) * rolloff
    width = int(math.ceil(lowpass_filter_width * orig / base_freq))
    idx = np.arange(-width, width + orig, dtype=np.float64) / orig      # (K,)
    t = np.arange(0, -new, -1, dtype=np.float64)[:, None] / new + idx[None, :]
    t = t * base_freq
    t = np.clip(t, -lowpass_filter_width, lowpass_filter_width)
    window = np.cos(t * np.pi / lowpass_filter_width / 2.0) ** 2
    t = t * np.pi
    scale = base_freq / orig
    kern = np.where(t == 0.0, 1.0, np.sin(t) / np.where(t == 0.0, 1.0, t))
    kern = (kern * window * scale).astype(np.float32)
    return kern, width, orig, new            # kern: (new, K)


def _make_resample_kernel(taps, n_out):
    """VPU FIR: out[p, b, i] = sum_k taps[p, k] * x[b, i + k]."""
    new, K = taps.shape
    w = [[float(taps[p, k]) for k in range(K)] for p in range(new)]

    def kernel(x_ref, out_ref):
        x = x_ref[...]                                     # (B, Lin) f32
        # K shifted views of the padded waveform (static, lane-dense), shared
        # across all 3 output phases.
        segs = [x[:, k:k + n_out] for k in range(K)]
        for p in range(new):
            acc = segs[0] * w[p][0]
            for k in range(1, K):
                acc = acc + segs[k] * w[p][k]
            out_ref[p, :, :] = acc                         # full-lane store

    return kernel


def resample_16k_to_48k(x):
    """x: [B, L] float32 @16 kHz -> [B, 3L] float32 @48 kHz (torchaudio semantics)."""
    taps, width, orig, new = _sinc_resample_taps(16000, 48000)   # orig=1, new=3
    assert orig == 1
    B, L = x.shape
    Lout = _round_up(L, 128)
    Lin = Lout + 128                      # room for the K-1 tap lookahead
    # zero-pad exactly like torchaudio: `width` zeros left, zeros right
    x_in = jnp.pad(x, ((0, 0), (width, Lin - width - L)))

    out = pl.pallas_call(
        _make_resample_kernel(taps, Lout),
        out_shape=jax.ShapeDtypeStruct((new, B, Lout), jnp.float32),
        grid=(1,),
        in_specs=[pl.BlockSpec((B, Lin), lambda i: (0, 0))],
        out_specs=pl.BlockSpec((new, B, Lout), lambda i: (0, 0, 0)),
        compiler_params=pltpu.CompilerParams(
            dimension_semantics=("arbitrary",),
            vmem_limit_bytes=32 * 1024 * 1024),
    )(x_in)
    # interleave phases: y[b, 3*i + p] = out[p, b, i]   (wrapper reshape)
    return jnp.transpose(out[:, :, :L], (1, 2, 0)).reshape(B, new * L)


# ----------------------------------------------------------------------------
# Mel-spectrogram constants (torchaudio MelSpectrogram defaults: hann window,
# center/reflect, power=2.0, onesided, norm=None, mel_scale='htk')
# ----------------------------------------------------------------------------
def _dft_hann_matrix_np(n_fft, n_freq_pad):
    """hann-window folded, concatenated (cos | -sin) rDFT matrix, zero-padded."""
    n_freq = n_fft // 2 + 1
    n = np.arange(n_fft, dtype=np.float64)[:, None]
    f = np.arange(n_freq_pad, dtype=np.float64)[None, :]
    ang = 2.0 * np.pi * n * f / n_fft
    cr = np.cos(ang)
    ci = -np.sin(ang)
    cr[:, n_freq:] = 0.0
    ci[:, n_freq:] = 0.0
    hann = 0.5 * (1.0 - np.cos(2.0 * np.pi * np.arange(n_fft) / n_fft))
    return (hann[:, None] * np.concatenate([cr, ci], axis=1)).astype(np.float32)


def _mel_filterbank_np(n_freq, n_mels, sr, fmin, fmax):
    """torchaudio.functional.melscale_fbanks(norm=None, mel_scale='htk')."""
    def hz_to_mel(f):
        return 2595.0 * np.log10(1.0 + f / 700.0)

    def mel_to_hz(m):
        return 700.0 * (10.0 ** (m / 2595.0) - 1.0)

    all_freqs = np.linspace(0.0, sr / 2.0, n_freq)
    m_pts = np.linspace(hz_to_mel(fmin), hz_to_mel(fmax), n_mels + 2)
    f_pts = mel_to_hz(m_pts)
    f_diff = f_pts[1:] - f_pts[:-1]
    slopes = f_pts[None, :] - all_freqs[:, None]
    down = -slopes[:, :-2] / f_diff[None, :-1]
    up = slopes[:, 2:] / f_diff[None, 1:]
    fb = np.maximum(0.0, np.minimum(down, up))
    return fb.astype(np.float32)             # (n_freq, n_mels)


# ----------------------------------------------------------------------------
# Fused mel-spectrogram + time mean-pool + CLAP projection head kernel
# ----------------------------------------------------------------------------
def _make_mel_pool_head_kernel(n_freq_pad):
    def kernel(frames_ref, dftw_ref, fb_ref, wh_ref, b1_ref, w2_ref, b2_ref,
               out_ref, acc_ref):
        j = pl.program_id(0)

        @pl.when(j == 0)
        def _init():
            acc_ref[...] = jnp.zeros_like(acc_ref)

        B, TT, n_fft = frames_ref.shape
        fr = frames_ref[...].reshape(B * TT, n_fft)               # bf16
        # windowed rDFT: single MXU matmul against (cos | -sin) * hann
        spec = jnp.dot(fr, dftw_ref[...],
                       preferred_element_type=jnp.float32)        # (B*TT, 2*nf)
        re = spec[:, :n_freq_pad]
        im = spec[:, n_freq_pad:]
        power = (re * re + im * im).astype(jnp.bfloat16)          # |rfft|^2
        mel = jnp.dot(power, fb_ref[...],
                      preferred_element_type=jnp.float32)         # (B*TT, 128)
        # zero-padded time rows contribute exactly zero -> sum is exact;
        # the 1/T mean scale is folded into wh in the wrapper.
        acc_ref[...] += jnp.sum(mel.reshape(B, TT, -1), axis=1)   # (B, 128)

        @pl.when(j == pl.num_programs(0) - 1)
        def _finalize():
            pooled = acc_ref[...].astype(jnp.bfloat16)
            # TODO(synk): HTSAT encoder stand-in — pooled-mel linear lift,
            # algebraically folded with the first projection Linear (wh).
            h = jnp.dot(pooled, wh_ref[...],
                        preferred_element_type=jnp.float32) + b1_ref[...]
            h = jnp.maximum(h, 0.0)
            out_ref[...] = jnp.dot(h.astype(jnp.bfloat16), w2_ref[...],
                                   preferred_element_type=jnp.float32) + b2_ref[...]

    return kernel


def clap_mel_pool_head(y48, params, *, n_fft=256, hop=128, n_mels=64,
                       sr=48000, fmin=50.0, fmax=14000.0):
    """y48: [B, L48] @48 kHz -> CLAP audio embedding [B, embed_dim]."""
    wl, w1, b1, w2, b2 = params
    B, _ = y48.shape
    n_freq = n_fft // 2 + 1
    n_freq_pad = _round_up(n_freq, 128)          # 129 -> 256
    n_mels_pad = _round_up(n_mels, 128)          # 64  -> 128
    embed_dim = w2.shape[1]

    # STFT framing (center=True, pad_mode='reflect') done in the wrapper.
    pad = n_fft // 2
    y_pad = jnp.pad(y48, ((0, 0), (pad, pad)), mode="reflect")
    T = 1 + (y_pad.shape[1] - n_fft) // hop
    if n_fft == 2 * hop:
        # gather-free framing: two hop-aligned views + lane-dim concat
        a = y_pad[:, :T * hop].reshape(B, T, hop)
        b = y_pad[:, hop:T * hop + hop].reshape(B, T, hop)
        frames = jnp.concatenate([a, b], axis=-1).astype(jnp.bfloat16)
    else:
        idx = jnp.arange(T)[:, None] * hop + jnp.arange(n_fft)[None, :]
        frames = y_pad[:, idx].astype(jnp.bfloat16)              # (B, T, n_fft)

    # time tile: large when possible, full extent otherwise (16-row granule
    # keeps bf16 sublane packing happy).
    TT = 256 if T >= 256 else _round_up(T, 16)
    Tp = _round_up(T, TT)
    frames = jnp.pad(frames, ((0, 0), (0, Tp - T), (0, 0)))      # zero frames

    # constants (bf16 MXU operands, f32 accumulation inside the kernel)
    dftw = jnp.asarray(_dft_hann_matrix_np(n_fft, n_freq_pad), jnp.bfloat16)
    fb_np = np.zeros((n_freq_pad, n_mels_pad), np.float32)
    fb_np[:n_freq, :n_mels] = _mel_filterbank_np(n_freq, n_mels, sr, fmin, fmax)
    fb = jnp.asarray(fb_np, jnp.bfloat16)

    # head weights: encoder-stand-in lift folded with the first Linear and the
    # 1/T time-mean scale -> a single (n_mels_pad, embed_dim) matrix.
    wl_pad = jnp.zeros((n_mels_pad, wl.shape[1]), jnp.float32).at[:n_mels].set(wl)
    wh = ((wl_pad @ w1) * (1.0 / float(T))).astype(jnp.bfloat16)
    w2_b = w2.astype(jnp.bfloat16)

    out = pl.pallas_call(
        _make_mel_pool_head_kernel(n_freq_pad),
        out_shape=jax.ShapeDtypeStruct((B, embed_dim), jnp.float32),
        grid=(Tp // TT,),
        in_specs=[
            pl.BlockSpec((B, TT, n_fft), lambda j: (0, j, 0)),          # frames
            pl.BlockSpec((n_fft, 2 * n_freq_pad), lambda j: (0, 0)),    # dftw
            pl.BlockSpec((n_freq_pad, n_mels_pad), lambda j: (0, 0)),   # fb
            pl.BlockSpec((n_mels_pad, embed_dim), lambda j: (0, 0)),    # wh
            pl.BlockSpec((1, embed_dim), lambda j: (0, 0)),             # b1
            pl.BlockSpec((embed_dim, embed_dim), lambda j: (0, 0)),     # w2
            pl.BlockSpec((1, embed_dim), lambda j: (0, 0)),             # b2
        ],
        out_specs=pl.BlockSpec((B, embed_dim), lambda j: (0, 0)),
        scratch_shapes=[pltpu.VMEM((B, n_mels_pad), jnp.float32)],
        compiler_params=pltpu.CompilerParams(
            dimension_semantics=("arbitrary",),
            vmem_limit_bytes=32 * 1024 * 1024),
    )(frames, dftw, fb, wh, b1, w2_b, b2)
    return out


# ----------------------------------------------------------------------------
# Parameters (deterministic, in-script)
# ----------------------------------------------------------------------------
def init_params(key, n_mels=64, enc_dim=1024, embed_dim=512):
    k1, k2, k3 = jax.random.split(key, 3)
    wl = jax.random.normal(k1, (n_mels, enc_dim), jnp.float32) / math.sqrt(n_mels)
    w1 = jax.random.normal(k2, (enc_dim, embed_dim), jnp.float32) / math.sqrt(enc_dim)
    b1 = jnp.zeros((1, embed_dim), jnp.float32)
    w2 = jax.random.normal(k3, (embed_dim, embed_dim), jnp.float32) / math.sqrt(embed_dim)
    b2 = jnp.zeros((1, embed_dim), jnp.float32)
    return (wl, w1, b1, w2, b2)


# ----------------------------------------------------------------------------
# Full forward (CLAPAudioEmbedding.forward, embed_mode='audio')
# ----------------------------------------------------------------------------
def clap_audio_embedding(batch, params):
    # batch: [B, 1, L] 16 kHz waveform (PyTorch NCL input)
    x = batch[:, 0, :]                                   # squeeze(1)
    y48 = resample_16k_to_48k(x)                         # resample 16k -> 48k
    # SMALL-shape mel config (scaled-down HTSAT-base audio_cfg: n_mels=64,
    # fmin=50, fmax=14000, sr=48000; n_fft/hop shrunk 1024/480 -> 256/128).
    # TODO(synk): get_audio_features(fusion, repeatpad, max_len=380000) and the
    # HTSAT-base encoder are replaced by pooled-mel features feeding the
    # audio_projection MLP (fused into the mel kernel epilogue).
    embed = clap_mel_pool_head(y48, params, n_fft=256, hop=128, n_mels=64,
                               sr=48000, fmin=50.0, fmax=14000.0)
    return embed[:, None, :]                             # unsqueeze(1) -> [B,1,512]


if __name__ == "__main__":
    key = jax.random.PRNGKey(0)
    kx, kp = jax.random.split(key)
    B, L = 2, 1024                                       # small 16 kHz clip
    batch = jax.random.normal(kx, (B, 1, L), jnp.float32)
    params = init_params(kp, n_mels=64, enc_dim=1024, embed_dim=512)

    embed = jax.jit(clap_audio_embedding)(batch, params)
    jax.block_until_ready(embed)
    assert embed.shape == (B, 1, 512), embed.shape
    assert bool(jnp.all(jnp.isfinite(embed)))
    print("KERNEL_OK")
</pallas_src>

<mosaic_0001>
module attributes {stable_mosaic.version = 11 : i64} {
  func.func @kernel(%arg0: i32, %arg1: memref<2x1152xf32, #tpu.memory_space<vmem>>, %arg2: memref<3x2x1024xf32, #tpu.memory_space<vmem>>) attributes {dimension_semantics = [#tpu.dimension_semantics<arbitrary>], iteration_bounds = array<i64: 1>, scalar_prefetch = 0 : i64, scratch_operands = 0 : i64, tpu.core_type = #tpu.core_type<tc>, window_params = [{pipeline_mode = #tpu.pipeline_mode<synchronous>, transform_indices = @transform_0, window_bounds = array<i64: 2, 1152>}, {pipeline_mode = #tpu.pipeline_mode<synchronous>, transform_indices = @transform_1, window_bounds = array<i64: 3, 2, 1024>}]} {
    %c0 = arith.constant 0 : index
    %c0_0 = arith.constant 0 : index
    %0 = vector.load %arg1[%c0, %c0_0] : memref<2x1152xf32, #tpu.memory_space<vmem>>, vector<2x1152xf32>
    %1 = vector.extract_strided_slice %0 {offsets = [0, 0], sizes = [2, 1024], strides = [1, 1]} : vector<2x1152xf32> to vector<2x1024xf32>
    %2 = vector.extract_strided_slice %0 {offsets = [0, 1], sizes = [2, 1024], strides = [1, 1]} : vector<2x1152xf32> to vector<2x1024xf32>
    %3 = vector.extract_strided_slice %0 {offsets = [0, 2], sizes = [2, 1024], strides = [1, 1]} : vector<2x1152xf32> to vector<2x1024xf32>
    %4 = vector.extract_strided_slice %0 {offsets = [0, 3], sizes = [2, 1024], strides = [1, 1]} : vector<2x1152xf32> to vector<2x1024xf32>
    %5 = vector.extract_strided_slice %0 {offsets = [0, 4], sizes = [2, 1024], strides = [1, 1]} : vector<2x1152xf32> to vector<2x1024xf32>
    %6 = vector.extract_strided_slice %0 {offsets = [0, 5], sizes = [2, 1024], strides = [1, 1]} : vector<2x1152xf32> to vector<2x1024xf32>
    %7 = vector.extract_strided_slice %0 {offsets = [0, 6], sizes = [2, 1024], strides = [1, 1]} : vector<2x1152xf32> to vector<2x1024xf32>
    %8 = vector.extract_strided_slice %0 {offsets = [0, 7], sizes = [2, 1024], strides = [1, 1]} : vector<2x1152xf32> to vector<2x1024xf32>
    %9 = vector.extract_strided_slice %0 {offsets = [0, 8], sizes = [2, 1024], strides = [1, 1]} : vector<2x1152xf32> to vector<2x1024xf32>
    %10 = vector.extract_strided_slice %0 {offsets = [0, 9], sizes = [2, 1024], strides = [1, 1]} : vector<2x1152xf32> to vector<2x1024xf32>
    %11 = vector.extract_strided_slice %0 {offsets = [0, 10], sizes = [2, 1024], strides = [1, 1]} : vector<2x1152xf32> to vector<2x1024xf32>
    %12 = vector.extract_strided_slice %0 {offsets = [0, 11], sizes = [2, 1024], strides = [1, 1]} : vector<2x1152xf32> to vector<2x1024xf32>
    %13 = vector.extract_strided_slice %0 {offsets = [0, 12], sizes = [2, 1024], strides = [1, 1]} : vector<2x1152xf32> to vector<2x1024xf32>
    %14 = vector.extract_strided_slice %0 {offsets = [0, 13], sizes = [2, 1024], strides = [1, 1]} : vector<2x1152xf32> to vector<2x1024xf32>
    %15 = vector.extract_strided_slice %0 {offsets = [0, 14], sizes = [2, 1024], strides = [1, 1]} : vector<2x1152xf32> to vector<2x1024xf32>
    %cst = arith.constant -0.000000e+00 : f32
    %16 = vector.broadcast %cst : f32 to vector<2x1024xf32>
    %17 = arith.mulf %1, %16 : vector<2x1024xf32>
    %cst_1 = arith.constant -2.4526139E-6 : f32
    %18 = vector.broadcast %cst_1 : f32 to vector<2x1024xf32>
    %19 = arith.mulf %2, %18 : vector<2x1024xf32>
    %20 = arith.addf %17, %19 : vector<2x1024xf32>
    %cst_2 = arith.constant 7.33772933E-4 : f32
    %21 = vector.broadcast %cst_2 : f32 to vector<2x1024xf32>
    %22 = arith.mulf %3, %21 : vector<2x1024xf32>
    %23 = arith.addf %20, %22 : vector<2x1024xf32>
    %cst_3 = arith.constant -0.00258441712 : f32
    %24 = vector.broadcast %cst_3 : f32 to vector<2x1024xf32>
    %25 = arith.mulf %4, %24 : vector<2x1024xf32>
    %26 = arith.addf %23, %25 : vector<2x1024xf32>
    %cst_4 = arith.constant 0.00507102162 : f32
    %27 = vector.broadcast %cst_4 : f32 to vector<2x1024xf32>
    %28 = arith.mulf %5, %27 : vector<2x1024xf32>
    %29 = arith.addf %26, %28 : vector<2x1024xf32>
    %cst_5 = arith.constant -0.00754024368 : f32
    %30 = vector.broadcast %cst_5 : f32 to vector<2x1024xf32>
    %31 = arith.mulf %6, %30 : vector<2x1024xf32>
    %32 = arith.addf %29, %31 : vector<2x1024xf32>
    %cst_6 = arith.constant 0.00934162084 : f32
    %33 = vector.broadcast %cst_6 : f32 to vector<2x1024xf32>
    %34 = arith.mulf %7, %33 : vector<2x1024xf32>
    %35 = arith.addf %32, %34 : vector<2x1024xf32>
    %cst_7 = arith.constant 9.900000e-01 : f32
    %36 = vector.broadcast %cst_7 : f32 to vector<2x1024xf32>
    %37 = arith.mulf %8, %36 : vector<2x1024xf32>
    %38 = arith.addf %35, %37 : vector<2x1024xf32>
    %cst_8 = arith.constant 0.00934162084 : f32
    %39 = vector.broadcast %cst_8 : f32 to vector<2x1024xf32>
    %40 = arith.mulf %9, %39 : vector<2x1024xf32>
    %41 = arith.addf %38, %40 : vector<2x1024xf32>
    %cst_9 = arith.constant -0.00754024368 : f32
    %42 = vector.broadcast %cst_9 : f32 to vector<2x1024xf32>
    %43 = arith.mulf %10, %42 : vector<2x1024xf32>
    %44 = arith.addf %41, %43 : vector<2x1024xf32>
    %cst_10 = arith.constant 0.00507102162 : f32
    %45 = vector.broadcast %cst_10 : f32 to vector<2x1024xf32>
    %46 = arith.mulf %11, %45 : vector<2x1024xf32>
    %47 = arith.addf %44, %46 : vector<2x1024xf32>
    %cst_11 = arith.constant -0.00258441712 : f32
    %48 = vector.broadcast %cst_11 : f32 to vector<2x1024xf32>
    %49 = arith.mulf %12, %48 : vector<2x1024xf32>
    %50 = arith.addf %47, %49 : vector<2x1024xf32>
    %cst_12 = arith.constant 7.33772933E-4 : f32
    %51 = vector.broadcast %cst_12 : f32 to vector<2x1024xf32>
    %52 = arith.mulf %13, %51 : vector<2x1024xf32>
    %53 = arith.addf %50, %52 : vector<2x1024xf32>
    %cst_13 = arith.constant -2.4526139E-6 : f32
    %54 = vector.broadcast %cst_13 : f32 to vector<2x1024xf32>
    %55 = arith.mulf %14, %54 : vector<2x1024xf32>
    %56 = arith.addf %53, %55 : vector<2x1024xf32>
    %cst_14 = arith.constant -0.000000e+00 : f32
    %57 = vector.broadcast %cst_14 : f32 to vector<2x1024xf32>
    %58 = arith.mulf %15, %57 : vector<2x1024xf32>
    %59 = arith.addf %56, %58 : vector<2x1024xf32>
    %c0_15 = arith.constant 0 : index
    %c0_16 = arith.constant 0 : index
    %c0_17 = arith.constant 0 : index
    %60 = vector.load %arg2[%c0_15, %c0_16, %c0_17] : memref<3x2x1024xf32, #tpu.memory_space<vmem>>, vector<1x2x1024xf32>
    %61 = vector.shape_cast %60 : vector<1x2x1024xf32> to vector<2x1024xf32>
    %62 = vector.shape_cast %59 : vector<2x1024xf32> to vector<1x2x1024xf32>
    tpu.vector_store %arg2[%c0_15, %c0_16, %c0_17], %62 {strides = array<i32>} : memref<3x2x1024xf32, #tpu.memory_space<vmem>>, vector<1x2x1024xf32>,
    %cst_18 = arith.constant -0.000000e+00 : f32
    %63 = vector.broadcast %cst_18 : f32 to vector<2x1024xf32>
    %64 = arith.mulf %1, %63 : vector<2x1024xf32>
    %cst_19 = arith.constant -0.000000e+00 : f32
    %65 = vector.broadcast %cst_19 : f32 to vector<2x1024xf32>
    %66 = arith.mulf %2, %65 : vector<2x1024xf32>
    %67 = arith.addf %64, %66 : vector<2x1024xf32>
    %cst_20 = arith.constant -0.00161467108 : f32
    %68 = vector.broadcast %cst_20 : f32 to vector<2x1024xf32>
    %69 = arith.mulf %3, %68 : vector<2x1024xf32>
    %70 = arith.addf %67, %69 : vector<2x1024xf32>
    %cst_21 = arith.constant 0.010875782 : f32
    %71 = vector.broadcast %cst_21 : f32 to vector<2x1024xf32>
    %72 = arith.mulf %4, %71 : vector<2x1024xf32>
    %73 = arith.addf %70, %72 : vector<2x1024xf32>
    %cst_22 = arith.constant -0.0325850099 : f32
    %74 = vector.broadcast %cst_22 : f32 to vector<2x1024xf32>
    %75 = arith.mulf %5, %74 : vector<2x1024xf32>
    %76 = arith.addf %73, %75 : vector<2x1024xf32>
    %cst_23 = arith.constant 0.0763556808 : f32
    %77 = vector.broadcast %cst_23 : f32 to vector<2x1024xf32>
    %78 = arith.mulf %6, %77 : vector<2x1024xf32>
    %79 = arith.addf %76, %78 : vector<2x1024xf32>
    %cst_24 = arith.constant -0.178439796 : f32
    %80 = vector.broadcast %cst_24 : f32 to vector<2x1024xf32>
    %81 = arith.mulf %7, %80 : vector<2x1024xf32>
    %82 = arith.addf %79, %81 : vector<2x1024xf32>
    %cst_25 = arith.constant 0.815828382 : f32
    %83 = vector.broadcast %cst_25 : f32 to vector<2x1024xf32>
    %84 = arith.mulf %8, %83 : vector<2x1024xf32>
    %85 = arith.addf %82, %84 : vector<2x1024xf32>
    %cst_26 = arith.constant 0.406037718 : f32
    %86 = vector.broadcast %cst_26 : f32 to vector<2x1024xf32>
    %87 = arith.mulf %9, %86 : vector<2x1024xf32>
    %88 = arith.addf %85, %87 : vector<2x1024xf32>
    %cst_27 = arith.constant -0.140343055 : f32
    %89 = vector.broadcast %cst_27 : f32 to vector<2x1024xf32>
    %90 = arith.mulf %10, %89 : vector<2x1024xf32>
    %91 = arith.addf %88, %90 : vector<2x1024xf32>
    %cst_28 = arith.constant 0.0641220212 : f32
    %92 = vector.broadcast %cst_28 : f32 to vector<2x1024xf32>
    %93 = arith.mulf %11, %92 : vector<2x1024xf32>
    %94 = arith.addf %91, %93 : vector<2x1024xf32>
    %cst_29 = arith.constant -0.0269323979 : f32
    %95 = vector.broadcast %cst_29 : f32 to vector<2x1024xf32>
    %96 = arith.mulf %12, %95 : vector<2x1024xf32>
    %97 = arith.addf %94, %96 : vector<2x1024xf32>
    %cst_30 = arith.constant 0.00792389921 : f32
    %98 = vector.broadcast %cst_30 : f32 to vector<2x1024xf32>
    %99 = arith.mulf %13, %98 : vector<2x1024xf32>
    %100 = arith.addf %97, %99 : vector<2x1024xf32>
    %cst_31 = arith.constant -5.49052493E-4 : f32
    %101 = vector.broadcast %cst_31 : f32 to vector<2x1024xf32>
    %102 = arith.mulf %14, %101 : vector<2x1024xf32>
    %103 = arith.addf %100, %102 : vector<2x1024xf32>
    %cst_32 = arith.constant -0.000000e+00 : f32
    %104 = vector.broadcast %cst_32 : f32 to vector<2x1024xf32>
    %105 = arith.mulf %15, %104 : vector<2x1024xf32>
    %106 = arith.addf %103, %105 : vector<2x1024xf32>
    %c1 = arith.constant 1 : index
    %c0_33 = arith.constant 0 : index
    %c0_34 = arith.constant 0 : index
    %107 = vector.load %arg2[%c1, %c0_33, %c0_34] : memref<3x2x1024xf32, #tpu.memory_space<vmem>>, vector<1x2x1024xf32>
    %108 = vector.shape_cast %107 : vector<1x2x1024xf32> to vector<2x1024xf32>
    %109 = vector.shape_cast %106 : vector<2x1024xf32> to vector<1x2x1024xf32>
    tpu.vector_store %arg2[%c1, %c0_33, %c0_34], %109 {strides = array<i32>} : memref<3x2x1024xf32, #tpu.memory_space<vmem>>, vector<1x2x1024xf32>,
    %cst_35 = arith.constant -0.000000e+00 : f32
    %110 = vector.broadcast %cst_35 : f32 to vector<2x1024xf32>
    %111 = arith.mulf %1, %110 : vector<2x1024xf32>
    %cst_36 = arith.constant -0.000000e+00 : f32
    %112 = vector.broadcast %cst_36 : f32 to vector<2x1024xf32>
    %113 = arith.mulf %2, %112 : vector<2x1024xf32>
    %114 = arith.addf %111, %113 : vector<2x1024xf32>
    %cst_37 = arith.constant -5.49052493E-4 : f32
    %115 = vector.broadcast %cst_37 : f32 to vector<2x1024xf32>
    %116 = arith.mulf %3, %115 : vector<2x1024xf32>
    %117 = arith.addf %114, %116 : vector<2x1024xf32>
    %cst_38 = arith.constant 0.00792389921 : f32
    %118 = vector.broadcast %cst_38 : f32 to vector<2x1024xf32>
    %119 = arith.mulf %4, %118 : vector<2x1024xf32>
    %120 = arith.addf %117, %119 : vector<2x1024xf32>
    %cst_39 = arith.constant -0.0269323979 : f32
    %121 = vector.broadcast %cst_39 : f32 to vector<2x1024xf32>
    %122 = arith.mulf %5, %121 : vector<2x1024xf32>
    %123 = arith.addf %120, %122 : vector<2x1024xf32>
    %cst_40 = arith.constant 0.0641220212 : f32
    %124 = vector.broadcast %cst_40 : f32 to vector<2x1024xf32>
    %125 = arith.mulf %6, %124 : vector<2x1024xf32>
    %126 = arith.addf %123, %125 : vector<2x1024xf32>
    %cst_41 = arith.constant -0.140343055 : f32
    %127 = vector.broadcast %cst_41 : f32 to vector<2x1024xf32>
    %128 = arith.mulf %7, %127 : vector<2x1024xf32>
    %129 = arith.addf %126, %128 : vector<2x1024xf32>
    %cst_42 = arith.constant 0.406037718 : f32
    %130 = vector.broadcast %cst_42 : f32 to vector<2x1024xf32>
    %131 = arith.mulf %8, %130 : vector<2x1024xf32>
    %132 = arith.addf %129, %131 : vector<2x1024xf32>
    %cst_43 = arith.constant 0.815828382 : f32
    %133 = vector.broadcast %cst_43 : f32 to vector<2x1024xf32>
    %134 = arith.mulf %9, %133 : vector<2x1024xf32>
    %135 = arith.addf %132, %134 : vector<2x1024xf32>
    %cst_44 = arith.constant -0.178439796 : f32
    %136 = vector.broadcast %cst_44 : f32 to vector<2x1024xf32>
    %137 = arith.mulf %10, %136 : vector<2x1024xf32>
    %138 = arith.addf %135, %137 : vector<2x1024xf32>
    %cst_45 = arith.constant 0.0763556808 : f32
    %139 = vector.broadcast %cst_45 : f32 to vector<2x1024xf32>
    %140 = arith.mulf %11, %139 : vector<2x1024xf32>
    %141 = arith.addf %138, %140 : vector<2x1024xf32>
    %cst_46 = arith.constant -0.0325850099 : f32
    %142 = vector.broadcast %cst_46 : f32 to vector<2x1024xf32>
    %143 = arith.mulf %12, %142 : vector<2x1024xf32>
    %144 = arith.addf %141, %143 : vector<2x1024xf32>
    %cst_47 = arith.constant 0.010875782 : f32
    %145 = vector.broadcast %cst_47 : f32 to vector<2x1024xf32>
    %146 = arith.mulf %13, %145 : vector<2x1024xf32>
    %147 = arith.addf %144, %146 : vector<2x1024xf32>
    %cst_48 = arith.constant -0.00161467108 : f32
    %148 = vector.broadcast %cst_48 : f32 to vector<2x1024xf32>
    %149 = arith.mulf %14, %148 : vector<2x1024xf32>
    %150 = arith.addf %147, %149 : vector<2x1024xf32>
    %cst_49 = arith.constant -0.000000e+00 : f32
    %151 = vector.broadcast %cst_49 : f32 to vector<2x1024xf32>
    %152 = arith.mulf %15, %151 : vector<2x1024xf32>
    %153 = arith.addf %150, %152 : vector<2x1024xf32>
    %c2 = arith.constant 2 : index
    %c0_50 = arith.constant 0 : index
    %c0_51 = arith.constant 0 : index
    %154 = vector.load %arg2[%c2, %c0_50, %c0_51] : memref<3x2x1024xf32, #tpu.memory_space<vmem>>, vector<1x2x1024xf32>
    %155 = vector.shape_cast %154 : vector<1x2x1024xf32> to vector<2x1024xf32>
    %156 = vector.shape_cast %153 : vector<2x1024xf32> to vector<1x2x1024xf32>
    tpu.vector_store %arg2[%c2, %c0_50, %c0_51], %156 {strides = array<i32>} : memref<3x2x1024xf32, #tpu.memory_space<vmem>>, vector<1x2x1024xf32>,
    return
  }
  func.func @transform_0(%arg0: i32) -> (i32, i32) {
    %c0_i32 = arith.constant 0 : i32
    %c0_i32_0 = arith.constant 0 : i32
    %c0_i32_1 = arith.constant 0 : i32
    return %c0_i32, %c0_i32_0 : i32, i32
  }
  func.func @transform_1(%arg0: i32) -> (i32, i32, i32) {
    %c0_i32 = arith.constant 0 : i32
    %c0_i32_0 = arith.constant 0 : i32
    %c0_i32_1 = arith.constant 0 : i32
    %c0_i32_2 = arith.constant 0 : i32
    return %c0_i32, %c0_i32_0, %c0_i32_1 : i32, i32, i32
  }
}

module attributes {stable_mosaic.version = 11 : i64} {
  func.func @kernel(%arg0: i32, %arg1: memref<2x32x256xbf16, #tpu.memory_space<vmem>>, %arg2: memref<256x512xbf16, #tpu.memory_space<vmem>>, %arg3: memref<256x128xbf16, #tpu.memory_space<vmem>>, %arg4: memref<128x512xbf16, #tpu.memory_space<vmem>>, %arg5: memref<1x512xf32, #tpu.memory_space<vmem>>, %arg6: memref<512x512xbf16, #tpu.memory_space<vmem>>, %arg7: memref<1x512xf32, #tpu.memory_space<vmem>>, %arg8: memref<2x512xf32, #tpu.memory_space<vmem>>, %arg9: memref<2x128xf32, #tpu.memory_space<vmem>>) attributes {dimension_semantics = [#tpu.dimension_semantics<arbitrary>], iteration_bounds = array<i64: 1>, scalar_prefetch = 0 : i64, scratch_operands = 1 : i64, tpu.core_type = #tpu.core_type<tc>, window_params = [{transform_indices = @transform_0, window_bounds = array<i64: 2, 32, 256>}, {pipeline_mode = #tpu.pipeline_mode<synchronous>, transform_indices = @transform_1, window_bounds = array<i64: 256, 512>}, {pipeline_mode = #tpu.pipeline_mode<synchronous>, transform_indices = @transform_2, window_bounds = array<i64: 256, 128>}, {pipeline_mode = #tpu.pipeline_mode<synchronous>, transform_indices = @transform_3, window_bounds = array<i64: 128, 512>}, {pipeline_mode = #tpu.pipeline_mode<synchronous>, transform_indices = @transform_4, window_bounds = array<i64: 1, 512>}, {pipeline_mode = #tpu.pipeline_mode<synchronous>, transform_indices = @transform_5, window_bounds = array<i64: 512, 512>}, {pipeline_mode = #tpu.pipeline_mode<synchronous>, transform_indices = @transform_6, window_bounds = array<i64: 1, 512>}, {pipeline_mode = #tpu.pipeline_mode<synchronous>, transform_indices = @transform_7, window_bounds = array<i64: 2, 512>}]} {
    %c0_i32 = arith.constant 0 : i32
    %0 = arith.cmpi eq, %arg0, %c0_i32 : i32
    %1 = arith.extui %0 : i1 to i32
    %c0_i32_0 = arith.constant 0 : i32
    %2 = arith.cmpi ne, %1, %c0_i32_0 : i32
    scf.if %2 {
      %cst_15 = arith.constant 0.000000e+00 : f32
      %23 = vector.broadcast %cst_15 : f32 to vector<2x128xf32>
      %c0_16 = arith.constant 0 : index
      %c0_17 = arith.constant 0 : index
      %24 = vector.load %arg9[%c0_16, %c0_17] : memref<2x128xf32, #tpu.memory_space<vmem>>, vector<2x128xf32>
      tpu.vector_store %arg9[%c0_16, %c0_17], %23 {strides = array<i32>} : memref<2x128xf32, #tpu.memory_space<vmem>>, vector<2x128xf32>,
    } else {
    }
    %c0 = arith.constant 0 : index
    %c0_1 = arith.constant 0 : index
    %c0_2 = arith.constant 0 : index
    %3 = vector.load %arg1[%c0, %c0_1, %c0_2] : memref<2x32x256xbf16, #tpu.memory_space<vmem>>, vector<2x32x256xbf16>
    %4 = vector.shape_cast %3 : vector<2x32x256xbf16> to vector<64x256xbf16>
    %c0_3 = arith.constant 0 : index
    %c0_4 = arith.constant 0 : index
    %5 = vector.load %arg2[%c0_3, %c0_4] : memref<256x512xbf16, #tpu.memory_space<vmem>>, vector<256x512xbf16>
    %cst = arith.constant dense<0.000000e+00> : vector<64x512xf32>
    %6 = tpu.matmul %4, %5, %cst {dimension_numbers = #tpu.dot_dimension_numbers<[1], [0], [0], [1], [0, 0, 1, 1], [], []>} : vector<64x256xbf16>, vector<256x512xbf16>, vector<64x512xf32> -> vector<64x512xf32>
    %7 = vector.extract_strided_slice %6 {offsets = [0, 0], sizes = [64, 256], strides = [1, 1]} : vector<64x512xf32> to vector<64x256xf32>
    %8 = vector.extract_strided_slice %6 {offsets = [0, 256], sizes = [64, 256], strides = [1, 1]} : vector<64x512xf32> to vector<64x256xf32>
    %9 = arith.mulf %7, %7 : vector<64x256xf32>
    %10 = arith.mulf %8, %8 : vector<64x256xf32>
    %11 = arith.addf %9, %10 : vector<64x256xf32>
    %12 = arith.truncf %11 : vector<64x256xf32> to vector<64x256xbf16>
    %c0_5 = arith.constant 0 : index
    %c0_6 = arith.constant 0 : index
    %13 = vector.load %arg3[%c0_5, %c0_6] : memref<256x128xbf16, #tpu.memory_space<vmem>>, vector<256x128xbf16>
    %cst_7 = arith.constant dense<0.000000e+00> : vector<64x128xf32>
    %14 = tpu.matmul %12, %13, %cst_7 {dimension_numbers = #tpu.dot_dimension_numbers<[1], [0], [0], [1], [0, 0, 1, 1], [], []>} : vector<64x256xbf16>, vector<256x128xbf16>, vector<64x128xf32> -> vector<64x128xf32>
    %c0_8 = arith.constant 0 : index
    %c0_9 = arith.constant 0 : index
    %15 = vector.load %arg9[%c0_8, %c0_9] : memref<2x128xf32, #tpu.memory_space<vmem>>, vector<2x128xf32>
    %16 = vector.shape_cast %14 : vector<64x128xf32> to vector<2x32x128xf32>
    %cst_10 = arith.constant dense<0.000000e+00> : vector<2x128xf32>
    %17 = vector.multi_reduction <add>, %16, %cst_10 [1] : vector<2x32x128xf32> to vector<2x128xf32>
    %18 = arith.addf %15, %17 : vector<2x128xf32>
    %c0_11 = arith.constant 0 : index
    %c0_12 = arith.constant 0 : index
    %19 = vector.load %arg9[%c0_11, %c0_12] : memref<2x128xf32, #tpu.memory_space<vmem>>, vector<2x128xf32>
    tpu.vector_store %arg9[%c0_11, %c0_12], %18 {strides = array<i32>} : memref<2x128xf32, #tpu.memory_space<vmem>>, vector<2x128xf32>,
    %c0_i32_13 = arith.constant 0 : i32
    %20 = arith.cmpi eq, %arg0, %c0_i32_13 : i32
    %21 = arith.extui %20 : i1 to i32
    %c0_i32_14 = arith.constant 0 : i32
    %22 = arith.cmpi ne, %21, %c0_i32_14 : i32
    scf.if %22 {
      %c0_15 = arith.constant 0 : index
      %c0_16 = arith.constant 0 : index
      %23 = vector.load %arg9[%c0_15, %c0_16] : memref<2x128xf32, #tpu.memory_space<vmem>>, vector<2x128xf32>
      %24 = arith.truncf %23 : vector<2x128xf32> to vector<2x128xbf16>
      %c0_17 = arith.constant 0 : index
      %c0_18 = arith.constant 0 : index
      %25 = vector.load %arg4[%c0_17, %c0_18] : memref<128x512xbf16, #tpu.memory_space<vmem>>, vector<128x512xbf16>
      %cst_19 = arith.constant dense<0.000000e+00> : vector<2x512xf32>
      %26 = tpu.matmul %24, %25, %cst_19 {dimension_numbers = #tpu.dot_dimension_numbers<[1], [0], [0], [1], [0, 0, 1, 1], [], []>} : vector<2x128xbf16>, vector<128x512xbf16>, vector<2x512xf32> -> vector<2x512xf32>
      %c0_20 = arith.constant 0 : index
      %c0_21 = arith.constant 0 : index
      %27 = vector.load %arg5[%c0_20, %c0_21] : memref<1x512xf32, #tpu.memory_space<vmem>>, vector<1x512xf32>
      %28 = vector.broadcast %27 : vector<1x512xf32> to vector<2x512xf32>
      %29 = arith.addf %26, %28 : vector<2x512xf32>
      %cst_22 = arith.constant 0.000000e+00 : f32
      %30 = vector.broadcast %cst_22 : f32 to vector<2x512xf32>
      %31 = arith.maximumf %29, %30 : vector<2x512xf32>
      %32 = arith.truncf %31 : vector<2x512xf32> to vector<2x512xbf16>
      %c0_23 = arith.constant 0 : index
      %c0_24 = arith.constant 0 : index
      %33 = vector.load %arg6[%c0_23, %c0_24] : memref<512x512xbf16, #tpu.memory_space<vmem>>, vector<512x512xbf16>
      %cst_25 = arith.constant dense<0.000000e+00> : vector<2x512xf32>
      %34 = tpu.matmul %32, %33, %cst_25 {dimension_numbers = #tpu.dot_dimension_numbers<[1], [0], [0], [1], [0, 0, 1, 1], [], []>} : vector<2x512xbf16>, vector<512x512xbf16>, vector<2x512xf32> -> vector<2x512xf32>
      %c0_26 = arith.constant 0 : index
      %c0_27 = arith.constant 0 : index
      %35 = vector.load %arg7[%c0_26, %c0_27] : memref<1x512xf32, #tpu.memory_space<vmem>>, vector<1x512xf32>
      %36 = vector.broadcast %35 : vector<1x512xf32> to vector<2x512xf32>
      %37 = arith.addf %34, %36 : vector<2x512xf32>
      %c0_28 = arith.constant 0 : index
      %c0_29 = arith.constant 0 : index
      %38 = vector.load %arg8[%c0_28, %c0_29] : memref<2x512xf32, #tpu.memory_space<vmem>>, vector<2x512xf32>
      tpu.vector_store %arg8[%c0_28, %c0_29], %37 {strides = array<i32>} : memref<2x512xf32, #tpu.memory_space<vmem>>, vector<2x512xf32>,
    } else {
    }
    return
  }
  func.func @transform_0(%arg0: i32) -> (i32, i32, i32) {
    %c0_i32 = arith.constant 0 : i32
    %c0_i32_0 = arith.constant 0 : i32
    %c0_i32_1 = arith.constant 0 : i32
    return %c0_i32, %arg0, %c0_i32_0 : i32, i32, i32
  }
  func.func @transform_1(%arg0: i32) -> (i32, i32) {
    %c0_i32 = arith.constant 0 : i32
    %c0_i32_0 = arith.constant 0 : i32
    %c0_i32_1 = arith.constant 0 : i32
    return %c0_i32, %c0_i32_0 : i32, i32
  }
  func.func @transform_2(%arg0: i32) -> (i32, i32) {
    %c0_i32 = arith.constant 0 : i32
    %c0_i32_0 = arith.constant 0 : i32
    %c0_i32_1 = arith.constant 0 : i32
    return %c0_i32, %c0_i32_0 : i32, i32
  }
  func.func @transform_3(%arg0: i32) -> (i32, i32) {
    %c0_i32 = arith.constant 0 : i32
    %c0_i32_0 = arith.constant 0 : i32
    %c0_i32_1 = arith.constant 0 : i32
    return %c0_i32, %c0_i32_0 : i32, i32
  }
  func.func @transform_4(%arg0: i32) -> (i32, i32) {
    %c0_i32 = arith.constant 0 : i32
    %c0_i32_0 = arith.constant 0 : i32
    %c0_i32_1 = arith.constant 0 : i32
    return %c0_i32, %c0_i32_0 : i32, i32
  }
  func.func @transform_5(%arg0: i32) -> (i32, i32) {
    %c0_i32 = arith.constant 0 : i32
    %c0_i32_0 = arith.constant 0 : i32
    %c0_i32_1 = arith.constant 0 : i32
    return %c0_i32, %c0_i32_0 : i32, i32
  }
  func.func @transform_6(%arg0: i32) -> (i32, i32) {
    %c0_i32 = arith.constant 0 : i32
    %c0_i32_0 = arith.constant 0 : i32
    %c0_i32_1 = arith.constant 0 : i32
    return %c0_i32, %c0_i32_0 : i32, i32
  }
  func.func @transform_7(%arg0: i32) -> (i32, i32) {
    %c0_i32 = arith.constant 0 : i32
    %c0_i32_0 = arith.constant 0 : i32
    %c0_i32_1 = arith.constant 0 : i32
    return %c0_i32, %c0_i32_0 : i32, i32
  }
}

</mosaic_0001>

<bundles_post_ra>
// kernel: clap_audio_embedding.2
= control target key start
LH: loop header
LB: loop body
LE: loop exit
PB: predicated region body
PF: predicated region fallthrough
CT: control target
= control target key end

     0   :  { %s843_s12 = smov 127   ;;  %s845_s13 = smov 125   ;;  %vm28_vm0 = vcmask 1045504   ;;  %vm30_vm1 = vcmask 1039360   ;;  %vm54_vm2 = vcmask 1031168   ;;  %vm78_vm3 = vcmask 1022976   ;;  %s1615_s0 = inlined_call_operand.vmem [shape: f32[2,1152], index: 0, kind: input, shape index: {}]   ;;  %s1616_s1 = inlined_call_operand.vmem [shape: f32[3,2,1024], index: 1, kind: output, shape index: {}]  }
   0x1   :  { %v870_v0 = vld [vmem:[%s1615_s0 + $0x10] sm:$0x3]  ;;  %v875_v1 = vld [vmem:[%s1615_s0] sm:$0xff]  ;;  %v880_v2 = vld [vmem:[%s1615_s0 + $0x8] sm:$0xff]  ;;  %s844_s0 = smov 126   ;;  %s846_s14 = smov 124  }
   0x2   :  { %v883_v3 = vmul.f32 -2.452614e-06, %v870_v0  ;;  %v886_v4 = vmul.f32 -2.452614e-06, %v875_v1  ;;  %v38_v5 = vmul.f32 0.00073377293, %v875_v1 }
   0x3   :  { %v894_v6 = vmul.f32 -2.452614e-06, %v880_v2  ;;  %v40_v7 = vmul.f32 0.00073377293, %v870_v0  ;;  %v39_v8 = vmul.f32 0.00073377293, %v880_v2 }
   0x4   :  { %23 = vrot.lane.b32.xlu1 %v883_v3, %s843_s12  ;;  %19 = vrot.lane.b32.xlu0 %v886_v4, %s843_s12  ;;  %v63_v9 = vmul.f32 -0.0025844171, %v880_v2  ;;  %v62_v10 = vmul.f32 -0.0025844171, %v875_v1  ;;  %v86_v11 = vmul.f32 0.0050710216, %v875_v1 }
   0x5   :  { %v64_v12 = vmul.f32 -0.0025844171, %v870_v0  ;;  %v88_v13 = vmul.f32 0.0050710216, %v870_v0  ;;  %v87_v14 = vmul.f32 0.0050710216, %v880_v2 }
   0x6   :  { %v111_v15 = vmul.f32 -0.0075402437, %v880_v2  ;;  %v110_v16 = vmul.f32 -0.0075402437, %v875_v1  ;;  %s847_s15 = smov 123   ;;  %s848_s16 = smov 122  }
   0x7   :  { %v134_v17 = vmul.f32 0.009341621, %v875_v1  ;;  %v112_v18 = vmul.f32 -0.0075402437, %v870_v0  ;;  %v136_v19 = vmul.f32 0.009341621, %v870_v0 }
   0x8   :  { %44 = vrot.lane.b32.xlu1 %v38_v5, %s844_s0  ;;  %21 = vrot.lane.b32.xlu0 %v894_v6, %s843_s12  ;;  %v135_v20 = vmul.f32 0.009341621, %v880_v2  ;;  %v159_v21 = vmul.f32 0.99, %v880_v2  ;;  %v158_v22 = vmul.f32 0.99, %v875_v1 }
   0x9   :  { %s849_s17 = smov 121   ;;  %v160_v23 = vmul.f32 0.99, %v870_v0  ;;  %s850_s18 = smov 120   ;;  %v953_v24 = vmul.f32 -0.0, %v875_v1  ;;  %v959_v25 = vmul.f32 -0.0, %v880_v2 }
   0xa   :  { %s851_s19 = smov 119   ;;  %s852_s20 = smov 118   ;;  %v290_v26 = vmul.f32 -0.0, %v870_v0  ;;  %v968_v27 = vmul.f32 -0.0016146711, %v875_v1  ;;  %vm102_vm4 = vcmask 1014784  }
   0xb   :  { %s853_s21 = smov 117   ;;  %s854_s22 = smov 116   ;;  %v974_v28 = vmul.f32 -0.0016146711, %v880_v2  ;;  %v977_v29 = vmul.f32 -0.0016146711, %v870_v0 }
   0xc   :  { %48 = vrot.lane.b32.xlu1 %v40_v7, %s844_s0  ;;  %46 = vrot.lane.b32.xlu0 %v39_v8, %s844_s0  ;;  %s855_s23 = smov 115   ;;  %s856_s24 = smov 114   ;;  %1627 = vst [vmem:[#allocation2_spill] sm:$0xff] %v968_v27  ;;  %v984_v30 = vmul.f32 0.010875782, %v875_v1  ;;  %vm126_vm5 = vcmask 1006592  }
   0xd   :  { %1628 = vst [vmem:[#allocation3_spill] sm:$0xff] %v974_v28  ;;  %1629 = vst [vmem:[#allocation4_spill] sm:$0xff] %v977_v29  ;;  %v987_v31 = vmul.f32 0.010875782, %v880_v2  ;;  %v994_v32 = vmul.f32 0.010875782, %v870_v0 }
   0xe   :  { %1630 = vst [vmem:[#allocation5_spill] sm:$0xff] %v984_v30  ;;  %v997_v33 = vmul.f32 -0.03258501, %v875_v1  ;;  %v1004_v34 = vmul.f32 -0.03258501, %v880_v2  ;;  %vm150_vm6 = vcmask 998400  }
   0xf   :  { %1631 = vst [vmem:[#allocation6_spill] sm:$0xff] %v987_v31  ;;  %1632 = vst [vmem:[#allocation7_spill] sm:$0xff] %v994_v32  ;;  %v1007_v35 = vmul.f32 -0.03258501, %v870_v0  ;;  %v1014_v36 = vmul.f32 0.07635568, %v875_v1 }
  0x10   :  { %70 = vrot.lane.b32.xlu1 %v63_v9, %s845_s13  ;;  %68 = vrot.lane.b32.xlu0 %v62_v10, %s845_s13  ;;  %v1017_v37 = vmul.f32 0.07635568, %v880_v2  ;;  %v1024_v38 = vmul.f32 0.07635568, %v870_v0  ;;  %v1027_v39 = vmul.f32 -0.1784398, %v875_v1 }
  0x11   :  { %v1034_v40 = vmul.f32 -0.1784398, %v880_v2  ;;  %v1037_v41 = vmul.f32 -0.1784398, %v870_v0  ;;  %v1048_v44 = vmul.f32 0.8158284, %v875_v1 }
  0x12   :  { %v1051_v45 = vmul.f32 0.8158284, %v880_v2  ;;  %v1062_v48 = vmul.f32 0.8158284, %v870_v0  ;;  %v1065_v49 = vmul.f32 0.40603772, %v875_v1 }
  0x13   :  { %v1076_v52 = vmul.f32 0.40603772, %v880_v2  ;;  %v1079_v53 = vmul.f32 0.40603772, %v870_v0  ;;  %v1090_v56 = vmul.f32 -0.14034306, %v875_v1 }
  0x14   :  { %92 = vrot.lane.b32.xlu1 %v86_v11, %s846_s14  ;;  %72 = vrot.lane.b32.xlu0 %v64_v12, %s845_s13  ;;  %v1093_v57 = vmul.f32 -0.14034306, %v880_v2  ;;  %v1104_v60 = vmul.f32 -0.14034306, %v870_v0  ;;  %v515_v61 = vmul.f32 0.06412202, %v875_v1 }
  0x15   :  { %vm174_vm7 = vcmask 990208   ;;  %vm192_vm8 = vcmask 982016   ;;  %vm210_vm9 = vcmask 973824   ;;  %vm228_vm10 = vcmask 965632  }
  0x16   :  { %vm246_vm11 = vcmask 957440   ;;  %vm264_vm12 = vcmask 949248   ;;  %vm282_vm13 = vcmask 941056   ;;  %vm304_vm14 = vcmask 932864  }
  0x18   :  { %96 = vrot.lane.b32.xlu1 %v88_v13, %s846_s14  ;;  %94 = vrot.lane.b32.xlu0 %v87_v14, %s846_s14 }
  0x1c   :  { %118 = vrot.lane.b32.xlu1 %v111_v15, %s847_s15  ;;  %116 = vrot.lane.b32.xlu0 %v110_v16, %s847_s15 }
  0x20   :  { %140 = vrot.lane.b32.xlu1 %v134_v17, %s848_s16  ;;  %120 = vrot.lane.b32.xlu0 %v112_v18, %s847_s15 }
  0x24   :  { %144 = vrot.lane.b32.xlu1 %v136_v19, %s848_s16  ;;  %142 = vrot.lane.b32.xlu0 %v135_v20, %s848_s16 }
  0x28   :  { %166 = vrot.lane.b32.xlu1 %v159_v21, %s849_s17  ;;  %164 = vrot.lane.b32.xlu0 %v158_v22, %s849_s17 }
  0x2c   :  { %182 = vrot.lane.b32.xlu1 %v134_v17, %s850_s18  ;;  %168 = vrot.lane.b32.xlu0 %v160_v23, %s849_s17  ;;  %v1177_v23 = vmul.f32 -0.026932398, %v880_v2 }
  0x30   :  { %186 = vrot.lane.b32.xlu1 %v136_v19, %s850_s18  ;;  %184 = vrot.lane.b32.xlu0 %v135_v20, %s850_s18  ;;  %v1165_v19 = vmul.f32 0.007923899, %v870_v0 }
  0x32   :  { %1636 = vst [vmem:[#allocation11_spill] sm:$0xff] %v1165_v19 }
  0x34   :  { %202 = vrot.lane.b32.xlu1 %v111_v15, %s851_s19  ;;  %200 = vrot.lane.b32.xlu0 %v110_v16, %s851_s19  ;;  %v1151_v15 = vmul.f32 0.007923899, %v875_v1  ;;  %v1154_v16 = vmul.f32 0.007923899, %v880_v2 }
  0x38   :  { %218 = vrot.lane.b32.xlu1 %v86_v11, %s852_s20  ;;  %204 = vrot.lane.b32.xlu0 %v112_v18, %s851_s19  ;;  %v1137_v11 = vmul.f32 -0.0005490525, %v880_v2 }
  0x3a   :  { %1634 = vst [vmem:[#allocation9_spill] sm:$0xff] %v1137_v11 }
  0x3c   :  { %222 = vrot.lane.b32.xlu1 %v88_v13, %s852_s20  ;;  %220 = vrot.lane.b32.xlu0 %v87_v14, %s852_s20 }
  0x40   :  { %238 = vrot.lane.b32.xlu1 %v63_v9, %s853_s21  ;;  %236 = vrot.lane.b32.xlu0 %v62_v10, %s853_s21 }
  0x44   :  { %254 = vrot.lane.b32.xlu1 %v38_v5, %s854_s22  ;;  %240 = vrot.lane.b32.xlu0 %v64_v12, %s853_s21  ;;  %v1140_v12 = vmul.f32 -0.0005490525, %v870_v0 }
  0x46   :  { %1635 = vst [vmem:[#allocation10_spill] sm:$0xff] %v1140_v12 }
  0x48   :  { %258 = vrot.lane.b32.xlu1 %v40_v7, %s854_s22  ;;  %256 = vrot.lane.b32.xlu0 %v39_v8, %s854_s22  ;;  %v538_v7 = vmul.f32 -0.026932398, %v875_v1  ;;  %v1127_v8 = vmul.f32 -0.0005490525, %v875_v1 }
  0x4a   :  { %1633 = vst [vmem:[#allocation8_spill] sm:$0xff] %v1127_v8 }
  0x4c   :  { %274 = vrot.lane.b32.xlu1 %v894_v6, %s855_s23  ;;  %272 = vrot.lane.b32.xlu0 %v886_v4, %s855_s23  ;;  %v1116_v4 = vmul.f32 0.06412202, %v870_v0 }
  0x50   :  { %276 = vrot.lane.b32.xlu0 %v883_v3, %s855_s23  ;;  %294 = vrot.lane.b32.xlu1 %v953_v24, %s856_s24  ;;  %v516_v3 = vmul.f32 0.06412202, %v880_v2 }
  0x54   :  { %296 = vrot.lane.b32.xlu0 %v959_v25, %s856_s24  ;;  %298 = vrot.lane.b32.xlu1 %v290_v26, %s856_s24 }
  0x58   :  { %314 = vrot.lane.b32.xlu0 %v953_v24, %s843_s12  ;;  %316 = vrot.lane.b32.xlu1 %v959_v25, %s843_s12 }
  0x5c   :  { %318 = vrot.lane.b32.xlu0 %v290_v26, %s843_s12  ;;  %337 = vrot.lane.b32.xlu1 %v968_v27, %s844_s0  ;;  %v1180_v26 = vmul.f32 -0.026932398, %v870_v0 }
  0x60   :  { %339 = vrot.lane.b32.xlu0 %v974_v28, %s844_s0  ;;  %341 = vrot.lane.b32.xlu1 %v977_v29, %s844_s0 }
  0x64   :  { %360 = vrot.lane.b32.xlu0 %v984_v30, %s845_s13  ;;  %362 = vrot.lane.b32.xlu1 %v987_v31, %s845_s13 }
  0x68   :  { %364 = vrot.lane.b32.xlu0 %v994_v32, %s845_s13  ;;  %383 = vrot.lane.b32.xlu1 %v997_v33, %s846_s14 }
  0x6c   :  { %385 = vrot.lane.b32.xlu0 %v1004_v34, %s846_s14  ;;  %387 = vrot.lane.b32.xlu1 %v1007_v35, %s846_s14 }
  0x70   :  { %406 = vrot.lane.b32.xlu0 %v1014_v36, %s847_s15  ;;  %408 = vrot.lane.b32.xlu1 %v1017_v37, %s847_s15 }
  0x74   :  { %410 = vrot.lane.b32.xlu0 %v1024_v38, %s847_s15  ;;  %429 = vrot.lane.b32.xlu1 %v1027_v39, %s848_s16 }
  0x76   :  { %v1039_v42 = vpop.permute.xlu1 %23  ;;  %v1041_v43 = vpop.permute.xlu0 %19 }
  0x77   :  { %v25_v22 = vrot.slane %v1041_v43, 2  ;;  %v27_v29 = vrot.slane %v1039_v42, 2 }
  0x78   :  { %431 = vrot.lane.b32.xlu0 %v1034_v40, %s848_s16  ;;  %433 = vrot.lane.b32.xlu1 %v1037_v41, %s848_s16 }
  0x7a   :  { %v1053_v46 = vpop.permute.xlu1 %44  ;;  %v1055_v47 = vpop.permute.xlu0 %21 }
  0x7b   :  { %v26_v20 = vrot.slane %v1055_v47, 2  ;;  %v50_v28 = vrot.slane %v1053_v46, 2 }
  0x7c   :  { %452 = vrot.lane.b32.xlu0 %v1048_v44, %s849_s17  ;;  %454 = vrot.lane.b32.xlu1 %v1051_v45, %s849_s17 }
  0x7d   :  { %v29_v27 = vsel %vm28_vm0, %v25_v22, %v26_v20  ;;  %v32_v0 = vsel %vm28_vm0, %v26_v20, %v27_v29 }
  0x7e   :  { %v1067_v50 = vpop.permute.xlu1 %48  ;;  %v1069_v51 = vpop.permute.xlu0 %46  ;;  %v31_v42 = vsel %vm30_vm1, %v1041_v43, %v29_v27  ;;  %v33_v29 = vsel %vm30_vm1, %v1055_v47, %v32_v0 }
  0x7f   :  { %v52_v2 = vrot.slane %v1067_v50, 2  ;;  %v36_v50 = vadd.f32 %v31_v42, %v953_v24 }
  0x80   :  { %456 = vrot.lane.b32.xlu0 %v1062_v48, %s849_s17  ;;  %475 = vrot.lane.b32.xlu1 %v1065_v49, %s850_s18 }
  0x82   :  { %v1081_v54 = vpop.permute.xlu1 %70  ;;  %v1083_v55 = vpop.permute.xlu0 %68 }
  0x83   :  { %v75_v22 = vrot.slane %v1081_v54, 2  ;;  %v74_v32 = vrot.slane %v1083_v55, 2 }
  0x84   :  { %477 = vrot.lane.b32.xlu0 %v1076_v52, %s850_s18  ;;  %479 = vrot.lane.b32.xlu1 %v1079_v53, %s850_s18 }
  0x85   :  { %v77_v20 = vsel %vm28_vm0, %v74_v32, %v75_v22 }
  0x86   :  { %v1095_v58 = vpop.permute.xlu1 %92  ;;  %v1097_v59 = vpop.permute.xlu0 %72 }
  0x87   :  { %v76_v31 = vrot.slane %v1097_v59, 2  ;;  %v98_v47 = vrot.slane %v1095_v58, 2 }
  0x88   :  { %498 = vrot.lane.b32.xlu0 %v1090_v56, %s851_s19  ;;  %500 = vrot.lane.b32.xlu1 %v1093_v57, %s851_s19 }
  0x89   :  { %v80_v0 = vsel %vm28_vm0, %v75_v22, %v76_v31  ;;  %v79_v31 = vsel %vm78_vm3, %v1083_v55, %v77_v20 }
  0x8a   :  { %v1107_v62 = vpop.permute.xlu1 %96  ;;  %v1109_v63 = vpop.permute.xlu0 %94  ;;  %v81_v32 = vsel %vm78_vm3, %v1081_v54, %v80_v0 }
  0x8b   :  { %v100_v43 = vrot.slane %v1107_v62, 2  ;;  %v99_v59 = vrot.slane %v1109_v63, 2 }
  0x8c   :  { %502 = vrot.lane.b32.xlu0 %v1104_v60, %s851_s19  ;;  %521 = vrot.lane.b32.xlu1 %v515_v61, %s852_s20 }
  0x8e   :  { %v1118_v5 = vpop.permute.xlu1 %118  ;;  %v1120_v6 = vpop.permute.xlu0 %116 }
  0x90   :  { %523 = vrot.lane.b32.xlu0 %v516_v3, %s852_s20  ;;  %525 = vrot.lane.b32.xlu1 %v1116_v4, %s852_s20 }
  0x92   :  { %v1129_v9 = vpop.permute.xlu1 %140  ;;  %v1131_v10 = vpop.permute.xlu0 %120 }
  0x93   :  { %v124_v42 = vrot.slane %v1131_v10, 2  ;;  %v104_v10 = vsel %vm28_vm0, %v99_v59, %v100_v43 }
  0x94   :  { %544 = vrot.lane.b32.xlu0 %v538_v7, %s853_s21  ;;  %612 = vrot.lane.b32.xlu1 %v1127_v8, %s844_s0  ;;  %v105_v54 = vsel %vm102_vm4, %v1109_v63, %v104_v10 }
  0x96   :  { %v1142_v13 = vpop.permute.xlu1 %144  ;;  %v1144_v14 = vpop.permute.xlu0 %142 }
  0x98   :  { %614 = vrot.lane.b32.xlu0 %v1137_v11, %s844_s0  ;;  %616 = vrot.lane.b32.xlu1 %v1140_v12, %s844_s0  ;;  %v51_v12 = vrot.slane %v1069_v51, 2 }
  0x9a   :  { %v1156_v17 = vpop.permute.xlu1 %166  ;;  %v1158_v18 = vpop.permute.xlu0 %164  ;;  %v56_v27 = vsel %vm28_vm0, %v51_v12, %v52_v2  ;;  %v123_v2 = vrot.slane %v1118_v5, 2 }
  0x9b   :  { %v170_v0 = vrot.slane %v1158_v18, 2 }
  0x9c   :  { %629 = vrot.lane.b32.xlu0 %v1151_v15, %s845_s13  ;;  %631 = vrot.lane.b32.xlu1 %v1154_v16, %s845_s13  ;;  %v128_v22 = vsel %vm28_vm0, %v123_v2, %v124_v42 }
  0x9d   :  { %v129_v20 = vsel %vm126_vm5, %v1118_v5, %v128_v22 }
  0x9e   :  { %v1168_v1 = vpop.permute.xlu1 %182  ;;  %v1170_v21 = vpop.permute.xlu0 %168 }
  0xa0   :  { %633 = vrot.lane.b32.xlu0 %v1165_v19, %s845_s13  ;;  %646 = vrot.lane.b32.xlu1 %v538_v7, %s846_s14  ;;  %v53_v7 = vsel %vm28_vm0, %v50_v28, %v51_v12  ;;  %v37_v12 = vadd.f32 %v33_v29, %v959_v25  ;;  %v148_v29 = vrot.slane %v1142_v13, 2 }
  0xa1   :  { %v55_v28 = vsel %vm54_vm2, %v1053_v46, %v53_v7  ;;  %v57_v46 = vsel %vm54_vm2, %v1069_v51, %v56_v27  ;;  %v122_v7 = vrot.slane %v1120_v6, 2  ;;  %v101_v51 = vsel %vm28_vm0, %v98_v47, %v99_v59 }
  0xa2   :  { %v1186_v11 = vpop.permute.xlu1 %186  ;;  %v1188_v8 = vpop.permute.xlu0 %184  ;;  %v60_v62 = vadd.f32 %v55_v28, %v36_v50  ;;  %v61_v55 = vadd.f32 %v57_v46, %v37_v12  ;;  %v146_v28 = vrot.slane %v1129_v9, 2  ;;  %v103_v43 = vsel %vm102_vm4, %v1095_v58, %v101_v51 }
  0xa3   :  { %v125_v59 = vsel %vm28_vm0, %v122_v7, %v123_v2  ;;  %v171_v47 = vrot.slane %v1156_v17, 2  ;;  %v188_v58 = vrot.slane %v1168_v1, 2  ;;  %v190_v46 = vrot.slane %v1186_v11, 2 }
  0xa4   :  { %648 = vrot.lane.b32.xlu0 %v1177_v23, %s846_s14  ;;  %650 = vrot.lane.b32.xlu1 %v1180_v26, %s846_s14  ;;  %v84_v27 = vadd.f32 %v79_v31, %v60_v62  ;;  %v85_v13 = vadd.f32 %v81_v32, %v61_v55  ;;  %v189_v62 = vrot.slane %v1188_v8, 2  ;;  %v127_v2 = vsel %vm126_vm5, %v1120_v6, %v125_v59 }
  0xa5   :  { %v173_v32 = vsel %vm28_vm0, %v170_v0, %v171_v47 }
  0xa6   :  { %v1202_v30 = vpop.permute.xlu1 %202  ;;  %v1204_v19 = vpop.permute.xlu0 %200  ;;  %v109_v12 = vadd.f32 %v105_v54, %v85_v13  ;;  %v191_v6 = vsel %vm28_vm0, %v188_v58, %v189_v62 }
  0xa7   :  { %v207_v7 = vrot.slane %v1202_v30, 2  ;;  %v206_v51 = vrot.slane %v1204_v19, 2  ;;  %v193_v59 = vsel %vm192_vm8, %v1168_v1, %v191_v6 }
  0xa8   :  { %663 = vrot.lane.b32.xlu0 %v515_v61, %s847_s15  ;;  %665 = vrot.lane.b32.xlu1 %v516_v3, %s847_s15  ;;  %v133_v31 = vadd.f32 %v129_v20, %v109_v12 }
  0xaa   :  { %v1220_v61 = vpop.permute.xlu1 %218  ;;  %v1222_v3 = vpop.permute.xlu0 %204 }
  0xab   :  { %v224_v55 = vrot.slane %v1220_v61, 2 }
  0xac   :  { %667 = vrot.lane.b32.xlu0 %v1116_v4, %s847_s15  ;;  %680 = vrot.lane.b32.xlu1 %v1090_v56, %s848_s16  ;;  %v147_v4 = vrot.slane %v1144_v14, 2 }
  0xae   :  { %v1242_v50 = vpop.permute.xlu1 %222  ;;  %v1244_v56 = vpop.permute.xlu0 %220  ;;  %v152_v63 = vsel %vm28_vm0, %v147_v4, %v148_v29  ;;  %v149_v5 = vsel %vm28_vm0, %v146_v28, %v147_v4  ;;  %v194_v29 = vsel %vm28_vm0, %v189_v62, %v190_v46 }
  0xaf   :  { %v153_v11 = vsel %vm150_vm6, %v1144_v14, %v152_v63  ;;  %v208_v14 = vrot.slane %v1222_v3, 2  ;;  %v226_v3 = vrot.slane %v1242_v50, 2 }
  0xb0   :  { %682 = vrot.lane.b32.xlu0 %v1093_v57, %s848_s16  ;;  %684 = vrot.lane.b32.xlu1 %v1104_v60, %s848_s16  ;;  %v172_v57 = vrot.slane %v1170_v21, 2  ;;  %v108_v21 = vadd.f32 %v103_v43, %v84_v27  ;;  %v225_v27 = vrot.slane %v1244_v56, 2  ;;  %v157_v54 = vadd.f32 %v153_v11, %v133_v31 }
  0xb1   :  { %v195_v43 = vsel %vm192_vm8, %v1188_v8, %v194_v29  ;;  %v212_v63 = vsel %vm28_vm0, %v207_v7, %v208_v14 }
  0xb2   :  { %v1262_v42 = vpop.permute.xlu1 %238  ;;  %v1264_v60 = vpop.permute.xlu0 %236  ;;  %v176_v10 = vsel %vm28_vm0, %v171_v47, %v172_v57  ;;  %v132_v4 = vadd.f32 %v127_v2, %v108_v21  ;;  %v227_v57 = vsel %vm28_vm0, %v224_v55, %v225_v27  ;;  %v230_v8 = vsel %vm28_vm0, %v225_v27, %v226_v3 }
  0xb3   :  { %v177_v28 = vsel %vm174_vm7, %v1156_v17, %v176_v10  ;;  %v242_v47 = vrot.slane %v1264_v60, 2  ;;  %v213_v21 = vsel %vm210_vm9, %v1202_v30, %v212_v63  ;;  %v231_v10 = vsel %vm228_vm10, %v1244_v56, %v230_v8 }
  0xb4   :  { %697 = vrot.lane.b32.xlu0 %v1065_v49, %s849_s17  ;;  %699 = vrot.lane.b32.xlu1 %v1076_v52, %s849_s17  ;;  %v151_v52 = vsel %vm150_vm6, %v1129_v9, %v149_v5  ;;  %v175_v9 = vsel %vm174_vm7, %v1158_v18, %v173_v32  ;;  %v243_v18 = vrot.slane %v1262_v42, 2  ;;  %v181_v50 = vadd.f32 %v177_v28, %v157_v54 }
  0xb5   :  { %v156_v13 = vadd.f32 %v151_v52, %v132_v4 }
  0xb6   :  { %v1282_v49 = vpop.permute.xlu1 %254  ;;  %v241_v22 = vpop.permute.xlu0 %240  ;;  %v199_v46 = vadd.f32 %v195_v43, %v181_v50 }
  0xb7   :  { %v244_v17 = vrot.slane %v241_v22, 2  ;;  %v180_v0 = vadd.f32 %v175_v9, %v156_v13  ;;  %v260_v1 = vrot.slane %v1282_v49, 2 }
  0xb8   :  { %701 = vrot.lane.b32.xlu0 %v1079_v53, %s849_s17  ;;  %714 = vrot.lane.b32.xlu1 %v1048_v44, %s850_s18  ;;  %v209_v53 = vsel %vm28_vm0, %v206_v51, %v207_v7  ;;  %v229_v7 = vsel %vm228_vm10, %v1220_v61, %v227_v57 }
  0xb9   :  { %v198_v62 = vadd.f32 %v193_v59, %v180_v0  ;;  %v211_v5 = vsel %vm210_vm9, %v1204_v19, %v209_v53  ;;  %v217_v19 = vadd.f32 %v213_v21, %v199_v46 }
  0xba   :  { %v259_v20 = vpop.permute.xlu1 %258  ;;  %v257_v44 = vpop.permute.xlu0 %256 }
  0xbb   :  { %v262_v12 = vrot.slane %v259_v20, 2  ;;  %v261_v58 = vrot.slane %v257_v44, 2  ;;  %v216_v30 = vadd.f32 %v211_v5, %v198_v62  ;;  %v235_v29 = vadd.f32 %v231_v10, %v217_v19 }
  0xbc   :  { %716 = vrot.lane.b32.xlu0 %v1051_v45, %s850_s18  ;;  %718 = vrot.lane.b32.xlu1 %v1062_v48, %s850_s18  ;;  %v245_v45 = vsel %vm28_vm0, %v242_v47, %v243_v18  ;;  %v248_v48 = vsel %vm28_vm0, %v243_v18, %v244_v17 }
  0xbd   :  { %v263_v51 = vsel %vm28_vm0, %v260_v1, %v261_v58  ;;  %v266_v22 = vsel %vm28_vm0, %v261_v58, %v262_v12  ;;  %v247_v52 = vsel %vm246_vm11, %v1264_v60, %v245_v45  ;;  %v249_v56 = vsel %vm246_vm11, %v1262_v42, %v248_v48 }
  0xbe   :  { %v275_v2 = vpop.permute.xlu1 %274  ;;  %v273_v31 = vpop.permute.xlu0 %272  ;;  %v267_v4 = vsel %vm264_vm12, %v257_v44, %v266_v22  ;;  %v265_v55 = vsel %vm264_vm12, %v1282_v49, %v263_v51  ;;  %v253_v60 = vadd.f32 %v249_v56, %v235_v29 }
  0xbf   :  { %v279_v11 = vrot.slane %v275_v2, 2  ;;  %v278_v32 = vrot.slane %v273_v31, 2 }
  0xc0   :  { %731 = vrot.lane.b32.xlu0 %v1027_v39, %s851_s19  ;;  %733 = vrot.lane.b32.xlu1 %v1034_v40, %s851_s19  ;;  %v234_v39 = vadd.f32 %v229_v7, %v216_v30  ;;  %v271_v43 = vadd.f32 %v267_v4, %v253_v60  ;;  %v1640_v60 = vld [vmem:[#allocation7_spill] sm:$0xff] }
  0xc1   :  { %v281_v14 = vsel %vm28_vm0, %v278_v32, %v279_v11 }
  0xc2   :  { %v277_v61 = vpop.permute.xlu0 %276  ;;  %v295_v6 = vpop.permute.xlu1 %294  ;;  %v252_v42 = vadd.f32 %v247_v52, %v234_v39  ;;  %v283_v9 = vsel %vm282_vm13, %v273_v31, %v281_v14 }
  0xc3   :  { %v280_v40 = vrot.slane %v277_v61, 2  ;;  %v300_v54 = vrot.slane %v295_v6, 2  ;;  %v1638_v61 = vld [vmem:[#allocation5_spill] sm:$0xff] }
  0xc4   :  { %735 = vrot.lane.b32.xlu0 %v1037_v41, %s851_s19  ;;  %748 = vrot.lane.b32.xlu1 %v1014_v36, %s852_s20  ;;  %v270_v49 = vadd.f32 %v265_v55, %v252_v42 }
  0xc5   :  { %v284_v27 = vsel %vm28_vm0, %v279_v11, %v280_v40 }
  0xc6   :  { %v285_v28 = vsel %vm282_vm13, %v275_v2, %v284_v27  ;;  %v297_v3 = vpop.permute.xlu0 %296  ;;  %v299_v13 = vpop.permute.xlu1 %298  ;;  %v288_v36 = vadd.f32 %v283_v9, %v270_v49  ;;  %v1641_v27 = vld [vmem:[#allocation8_spill] sm:$0xff] }
  0xc7   :  { %v301_v59 = vrot.slane %v297_v3, 2  ;;  %v302_v53 = vrot.slane %v299_v13, 2  ;;  %v289_v41 = vadd.f32 %v285_v28, %v271_v43 }
  0xc8   :  { %750 = vrot.lane.b32.xlu0 %v1017_v37, %s852_s20  ;;  %752 = vrot.lane.b32.xlu1 %v1024_v38, %s852_s20 }
  0xc9   :  { %v303_v20 = vsel %vm28_vm0, %v300_v54, %v301_v59  ;;  %v306_v44 = vsel %vm28_vm0, %v301_v59, %v302_v53 }
  0xca   :  { %v1352_v63 = vsel %vm304_vm14, %v295_v6, %v303_v20  ;;  %v1354_v18 = vsel %vm304_vm14, %v297_v3, %v306_v44  ;;  %v315_v47 = vpop.permute.xlu0 %314  ;;  %v317_v17 = vpop.permute.xlu1 %316  ;;  %v1639_v6 = vld [vmem:[#allocation6_spill] sm:$0xff] }
  0xcb   :  { %v310_v0 = vadd.f32 %v1352_v63, %v288_v36  ;;  %v311_v50 = vadd.f32 %v1354_v18, %v289_v41  ;;  %v320_v37 = vrot.slane %v315_v47, 2  ;;  %v321_v57 = vrot.slane %v317_v17, 2  ;;  %v1642_v41 = vld [vmem:[#allocation9_spill] sm:$0xff]  ;;  %v1643_v20 = vld [vmem:[#allocation10_spill] sm:$0xff] }
  0xcc   :  { %546 = vrot.lane.b32.xlu0 %v1177_v23, %s853_s21  ;;  %548 = vrot.lane.b32.xlu1 %v1180_v26, %s853_s21 }
  0xcd   :  { %312 = vst [vmem:[%s1616_s1] sm:$0xff] %v310_v0  ;;  %313 = vst [vmem:[%s1616_s1 + $0x8] sm:$0xff] %v311_v50  ;;  %v323_v38 = vsel %vm28_vm0, %v320_v37, %v321_v57 }
  0xce   :  { %v324_v8 = vsel %vm30_vm1, %v315_v47, %v323_v38  ;;  %v319_v1 = vpop.permute.xlu0 %318  ;;  %v338_v12 = vpop.permute.xlu1 %337  ;;  %v1645_v38 = vld [vmem:[#allocation3_spill] sm:$0xff] }
  0xcf   :  { %v322_v58 = vrot.slane %v319_v1, 2  ;;  %v343_v26 = vrot.slane %v338_v12, 2 }
  0xd0   :  { %765 = vrot.lane.b32.xlu0 %v997_v33, %s853_s21  ;;  %767 = vrot.lane.b32.xlu1 %v1004_v34, %s853_s21  ;;  %v1381_v33 = vadd.f32 %v324_v8, %v953_v24 }
  0xd1   :  { %v325_v23 = vsel %vm28_vm0, %v321_v57, %v322_v58  ;;  %v1644_v57 = vld [vmem:[#allocation2_spill] sm:$0xff] }
  0xd2   :  { %v326_v46 = vsel %vm30_vm1, %v317_v17, %v325_v23  ;;  %v340_v62 = vpop.permute.xlu0 %339  ;;  %v342_v5 = vpop.permute.xlu1 %341 }
  0xd3   :  { %v344_v21 = vrot.slane %v340_v62, 2  ;;  %v345_v2 = vrot.slane %v342_v5, 2  ;;  %v1384_v34 = vadd.f32 %v326_v46, %v959_v25  ;;  %v1637_v25 = vld [vmem:[#allocation11_spill] sm:$0xff]  ;;  %v1646_v5 = vld [vmem:[#allocation4_spill] sm:$0xff] }
  0xd4   :  { %769 = vrot.lane.b32.xlu0 %v1007_v35, %s853_s21  ;;  %567 = vrot.lane.b32.xlu1 %v1151_v15, %s854_s22 }
  0xd5   :  { %v346_v31 = vsel %vm28_vm0, %v343_v26, %v344_v21  ;;  %v348_v45 = vsel %vm28_vm0, %v344_v21, %v345_v2 }
  0xd6   :  { %v347_v48 = vsel %vm54_vm2, %v338_v12, %v346_v31  ;;  %v349_v11 = vsel %vm54_vm2, %v340_v62, %v348_v45  ;;  %v361_v32 = vpop.permute.xlu0 %360  ;;  %v363_v10 = vpop.permute.xlu1 %362 }
  0xd7   :  { %v352_v35 = vadd.f32 %v347_v48, %v1381_v33  ;;  %v353_v15 = vadd.f32 %v349_v11, %v1384_v34  ;;  %v366_v7 = vrot.slane %v361_v32, 2  ;;  %v367_v24 = vrot.slane %v363_v10, 2 }
  0xd8   :  { %569 = vrot.lane.b32.xlu0 %v1154_v16, %s854_s22  ;;  %571 = vrot.lane.b32.xlu1 %v1637_v25, %s854_s22 }
  0xd9   :  { %v369_v30 = vsel %vm28_vm0, %v366_v7, %v367_v24 }
  0xda   :  { %v370_v19 = vsel %vm78_vm3, %v361_v32, %v369_v30  ;;  %v365_v51 = vpop.permute.xlu0 %364  ;;  %v384_v22 = vpop.permute.xlu1 %383 }
  0xdb   :  { %v375_v52 = vadd.f32 %v370_v19, %v352_v35  ;;  %v368_v56 = vrot.slane %v365_v51, 2  ;;  %v389_v16 = vrot.slane %v384_v22, 2 }
  0xdc   :  { %782 = vrot.lane.b32.xlu0 %v1638_v61, %s854_s22  ;;  %784 = vrot.lane.b32.xlu1 %v1639_v6, %s854_s22 }
  0xdd   :  { %v371_v29 = vsel %vm28_vm0, %v367_v24, %v368_v56 }
  0xde   :  { %v372_v39 = vsel %vm78_vm3, %v363_v10, %v371_v29  ;;  %v386_v14 = vpop.permute.xlu0 %385  ;;  %v388_v40 = vpop.permute.xlu1 %387 }
  0xdf   :  { %v376_v4 = vadd.f32 %v372_v39, %v353_v15  ;;  %v390_v55 = vrot.slane %v386_v14, 2  ;;  %v391_v42 = vrot.slane %v388_v40, 2 }
  0xe0   :  { %786 = vrot.lane.b32.xlu0 %v1640_v60, %s854_s22  ;;  %590 = vrot.lane.b32.xlu1 %v1641_v27, %s855_s23 }
  0xe1   :  { %v392_v54 = vsel %vm28_vm0, %v389_v16, %v390_v55  ;;  %v394_v9 = vsel %vm28_vm0, %v390_v55, %v391_v42 }
  0xe2   :  { %v393_v28 = vsel %vm102_vm4, %v384_v22, %v392_v54  ;;  %v395_v3 = vsel %vm102_vm4, %v386_v14, %v394_v9  ;;  %v407_v13 = vpop.permute.xlu0 %406  ;;  %v409_v43 = vpop.permute.xlu1 %408 }
  0xe3   :  { %v398_v49 = vadd.f32 %v393_v28, %v375_v52  ;;  %v399_v59 = vadd.f32 %v395_v3, %v376_v4  ;;  %v412_v53 = vrot.slane %v407_v13, 2  ;;  %v413_v36 = vrot.slane %v409_v43, 2 }
  0xe4   :  { %592 = vrot.lane.b32.xlu0 %v1642_v41, %s855_s23  ;;  %594 = vrot.lane.b32.xlu1 %v1643_v20, %s855_s23 }
  0xe5   :  { %v415_v44 = vsel %vm28_vm0, %v412_v53, %v413_v36 }
  0xe6   :  { %v416_v47 = vsel %vm126_vm5, %v407_v13, %v415_v44  ;;  %v411_v17 = vpop.permute.xlu0 %410  ;;  %v430_v0 = vpop.permute.xlu1 %429 }
  0xe7   :  { %v421_v50 = vadd.f32 %v416_v47, %v398_v49  ;;  %v414_v37 = vrot.slane %v411_v17, 2  ;;  %v435_v1 = vrot.slane %v430_v0, 2 }
  0xe8   :  { %799 = vrot.lane.b32.xlu0 %v1644_v57, %s855_s23  ;;  %801 = vrot.lane.b32.xlu1 %v1645_v38, %s855_s23 }
  0xe9   :  { %v417_v8 = vsel %vm28_vm0, %v413_v36, %v414_v37 }
  0xea   :  { %v418_v12 = vsel %vm126_vm5, %v409_v43, %v417_v8  ;;  %v432_v58 = vpop.permute.xlu0 %431  ;;  %v434_v23 = vpop.permute.xlu1 %433 }
  0xeb   :  { %v422_v26 = vadd.f32 %v418_v12, %v399_v59  ;;  %v436_v46 = vrot.slane %v432_v58, 2  ;;  %v437_v62 = vrot.slane %v434_v23, 2 }
  0xec   :  { %803 = vrot.lane.b32.xlu0 %v1646_v5, %s855_s23 }
  0xed   :  { %v438_v21 = vsel %vm28_vm0, %v435_v1, %v436_v46  ;;  %v440_v2 = vsel %vm28_vm0, %v436_v46, %v437_v62 }
  0xee   :  { %v439_v31 = vsel %vm150_vm6, %v430_v0, %v438_v21  ;;  %v441_v45 = vsel %vm150_vm6, %v432_v58, %v440_v2  ;;  %v453_v48 = vpop.permute.xlu0 %452  ;;  %v455_v11 = vpop.permute.xlu1 %454 }
  0xef   :  { %v444_v32 = vadd.f32 %v439_v31, %v421_v50  ;;  %v445_v10 = vadd.f32 %v441_v45, %v422_v26  ;;  %v458_v35 = vrot.slane %v453_v48, 2  ;;  %v459_v15 = vrot.slane %v455_v11, 2 }
  0xf1   :  { %v461_v7 = vsel %vm28_vm0, %v458_v35, %v459_v15 }
  0xf2   :  { %v462_v24 = vsel %vm174_vm7, %v453_v48, %v461_v7  ;;  %v457_v25 = vpop.permute.xlu0 %456  ;;  %v476_v30 = vpop.permute.xlu1 %475 }
  0xf3   :  { %v467_v19 = vadd.f32 %v462_v24, %v444_v32  ;;  %v460_v51 = vrot.slane %v457_v25, 2  ;;  %v481_v52 = vrot.slane %v476_v30, 2 }
  0xf5   :  { %v463_v22 = vsel %vm28_vm0, %v459_v15, %v460_v51 }
  0xf6   :  { %v464_v56 = vsel %vm174_vm7, %v455_v11, %v463_v22  ;;  %v478_v61 = vpop.permute.xlu0 %477  ;;  %v480_v6 = vpop.permute.xlu1 %479 }
  0xf7   :  { %v468_v29 = vadd.f32 %v464_v56, %v445_v10  ;;  %v482_v16 = vrot.slane %v478_v61, 2  ;;  %v483_v39 = vrot.slane %v480_v6, 2 }
  0xf9   :  { %v484_v14 = vsel %vm28_vm0, %v481_v52, %v482_v16  ;;  %v486_v40 = vsel %vm28_vm0, %v482_v16, %v483_v39 }
  0xfa   :  { %v485_v4 = vsel %vm192_vm8, %v476_v30, %v484_v14  ;;  %v487_v55 = vsel %vm192_vm8, %v478_v61, %v486_v40  ;;  %v499_v42 = vpop.permute.xlu0 %498  ;;  %v501_v60 = vpop.permute.xlu1 %500 }
  0xfb   :  { %v490_v27 = vadd.f32 %v485_v4, %v467_v19  ;;  %v491_v54 = vadd.f32 %v487_v55, %v468_v29  ;;  %v504_v9 = vrot.slane %v499_v42, 2  ;;  %v505_v28 = vrot.slane %v501_v60, 2 }
  0xfd   :  { %v507_v3 = vsel %vm28_vm0, %v504_v9, %v505_v28 }
  0xfe   :  { %v508_v13 = vsel %vm210_vm9, %v499_v42, %v507_v3  ;;  %v503_v43 = vpop.permute.xlu0 %502  ;;  %v522_v49 = vpop.permute.xlu1 %521 }
  0xff   :  { %v513_v59 = vadd.f32 %v508_v13, %v490_v27  ;;  %v506_v53 = vrot.slane %v503_v43, 2  ;;  %v527_v41 = vrot.slane %v522_v49, 2 }
 0x101   :  { %v509_v36 = vsel %vm28_vm0, %v505_v28, %v506_v53 }
 0x102   :  { %v510_v20 = vsel %vm210_vm9, %v501_v60, %v509_v36  ;;  %v524_v44 = vpop.permute.xlu0 %523  ;;  %v526_v47 = vpop.permute.xlu1 %525 }
 0x103   :  { %v514_v17 = vadd.f32 %v510_v20, %v491_v54  ;;  %v528_v0 = vrot.slane %v524_v44, 2  ;;  %v529_v50 = vrot.slane %v526_v47, 2 }
 0x105   :  { %v530_v37 = vsel %vm28_vm0, %v527_v41, %v528_v0  ;;  %v532_v57 = vsel %vm28_vm0, %v528_v0, %v529_v50 }
 0x106   :  { %v531_v38 = vsel %vm228_vm10, %v522_v49, %v530_v37  ;;  %v533_v8 = vsel %vm228_vm10, %v524_v44, %v532_v57  ;;  %v1446_v1 = vpop.permute.xlu0 %544  ;;  %v613_v12 = vpop.permute.xlu1 %612 }
 0x107   :  { %v1448_v58 = vadd.f32 %v531_v38, %v513_v59  ;;  %v1450_v23 = vadd.f32 %v533_v8, %v514_v17  ;;  %v618_v26 = vrot.slane %v613_v12, 2  ;;  %v550_v17 = vrot.slane %v1446_v1, 2 }
 0x10a   :  { %v615_v46 = vpop.permute.xlu0 %614  ;;  %v617_v62 = vpop.permute.xlu1 %616 }
 0x10b   :  { %v619_v5 = vrot.slane %v615_v46, 2  ;;  %v620_v21 = vrot.slane %v617_v62, 2 }
 0x10d   :  { %v621_v2 = vsel %vm28_vm0, %v618_v26, %v619_v5  ;;  %v623_v31 = vsel %vm28_vm0, %v619_v5, %v620_v21 }
 0x10e   :  { %v622_v45 = vsel %vm54_vm2, %v613_v12, %v621_v2  ;;  %v624_v48 = vsel %vm54_vm2, %v615_v46, %v623_v31  ;;  %v630_v11 = vpop.permute.xlu0 %629  ;;  %v632_v32 = vpop.permute.xlu1 %631 }
 0x10f   :  { %v627_v10 = vadd.f32 %v622_v45, %v1381_v33  ;;  %v628_v35 = vadd.f32 %v624_v48, %v1384_v34  ;;  %v635_v40 = vrot.slane %v630_v11, 2  ;;  %v636_v4 = vrot.slane %v632_v32, 2 }
 0x111   :  { %v638_v27 = vsel %vm28_vm0, %v635_v40, %v636_v4 }
 0x112   :  { %v634_v15 = vpop.permute.xlu0 %633  ;;  %v647_v7 = vpop.permute.xlu1 %646  ;;  %v639_v43 = vsel %vm78_vm3, %v630_v11, %v638_v27 }
 0x113   :  { %v637_v60 = vrot.slane %v634_v15, 2  ;;  %v652_v54 = vrot.slane %v647_v7, 2  ;;  %v644_v37 = vadd.f32 %v639_v43, %v627_v10 }
 0x115   :  { %v640_v49 = vsel %vm28_vm0, %v636_v4, %v637_v60 }
 0x116   :  { %v649_v24 = vpop.permute.xlu0 %648  ;;  %v651_v25 = vpop.permute.xlu1 %650  ;;  %v641_v0 = vsel %vm78_vm3, %v632_v32, %v640_v49 }
 0x117   :  { %v653_v9 = vrot.slane %v649_v24, 2  ;;  %v654_v28 = vrot.slane %v651_v25, 2  ;;  %v645_v62 = vadd.f32 %v641_v0, %v628_v35 }
 0x119   :  { %v655_v59 = vsel %vm28_vm0, %v652_v54, %v653_v9  ;;  %v657_v53 = vsel %vm28_vm0, %v653_v9, %v654_v28 }
 0x11a   :  { %v664_v30 = vpop.permute.xlu0 %663  ;;  %v666_v19 = vpop.permute.xlu1 %665  ;;  %v656_v57 = vsel %vm102_vm4, %v647_v7, %v655_v59  ;;  %v658_v38 = vsel %vm102_vm4, %v649_v24, %v657_v53 }
 0x11b   :  { %v669_v36 = vrot.slane %v664_v30, 2  ;;  %v670_v41 = vrot.slane %v666_v19, 2  ;;  %v661_v11 = vadd.f32 %v656_v57, %v644_v37  ;;  %v662_v32 = vadd.f32 %v658_v38, %v645_v62 }
 0x11d   :  { %v672_v8 = vsel %vm28_vm0, %v669_v36, %v670_v41 }
 0x11e   :  { %v668_v51 = vpop.permute.xlu0 %667  ;;  %v1458_v22 = vpop.permute.xlu1 %680  ;;  %v673_v10 = vsel %vm126_vm5, %v664_v30, %v672_v8 }
 0x11f   :  { %v671_v20 = vrot.slane %v668_v51, 2  ;;  %v686_v12 = vrot.slane %v1458_v22, 2  ;;  %v678_v30 = vadd.f32 %v673_v10, %v661_v11 }
 0x121   :  { %v674_v5 = vsel %vm28_vm0, %v670_v41, %v671_v20 }
 0x122   :  { %v1460_v52 = vpop.permute.xlu0 %682  ;;  %v685_v56 = vpop.permute.xlu1 %684  ;;  %v675_v15 = vsel %vm126_vm5, %v666_v19, %v674_v5 }
 0x123   :  { %v687_v26 = vrot.slane %v1460_v52, 2  ;;  %v688_v21 = vrot.slane %v685_v56, 2  ;;  %v679_v4 = vadd.f32 %v675_v15, %v662_v32 }
 0x125   :  { %v689_v35 = vsel %vm28_vm0, %v686_v12, %v687_v26 }
 0x126   :  { %v1462_v61 = vpop.permute.xlu0 %697  ;;  %v1464_v6 = vpop.permute.xlu1 %699  ;;  %v690_v19 = vsel %vm150_vm6, %v1458_v22, %v689_v35 }
 0x127   :  { %v703_v7 = vrot.slane %v1462_v61, 2  ;;  %v704_v24 = vrot.slane %v1464_v6, 2  ;;  %v695_v36 = vadd.f32 %v690_v19, %v678_v30 }
 0x129   :  { %v706_v27 = vsel %vm28_vm0, %v703_v7, %v704_v24 }
 0x12a   :  { %v1466_v29 = vpop.permute.xlu0 %701  ;;  %v1468_v33 = vpop.permute.xlu1 %714  ;;  %v707_v41 = vsel %vm174_vm7, %v1462_v61, %v706_v27 }
 0x12b   :  { %v705_v25 = vrot.slane %v1466_v29, 2  ;;  %v720_v51 = vrot.slane %v1468_v33, 2  ;;  %v712_v62 = vadd.f32 %v707_v41, %v695_v36 }
 0x12d   :  { %v708_v29 = vsel %vm28_vm0, %v704_v24, %v705_v25 }
 0x12e   :  { %v1470_v34 = vpop.permute.xlu0 %716  ;;  %v1472_v16 = vpop.permute.xlu1 %718 }
 0x12f   :  { %v722_v54 = vrot.slane %v1472_v16, 2  ;;  %v709_v16 = vsel %vm174_vm7, %v1464_v6, %v708_v29 }
 0x132   :  { %v1474_v39 = vpop.permute.xlu0 %731  ;;  %v1476_v14 = vpop.permute.xlu1 %733 }
 0x133   :  { %v737_v28 = vrot.slane %v1474_v39, 2  ;;  %v738_v43 = vrot.slane %v1476_v14, 2 }
 0x135   :  { %v740_v37 = vsel %vm28_vm0, %v737_v28, %v738_v43 }
 0x136   :  { %v1478_v55 = vpop.permute.xlu0 %735  ;;  %v1480_v42 = vpop.permute.xlu1 %748 }
 0x137   :  { %v754_v53 = vrot.slane %v1480_v42, 2  ;;  %v739_v57 = vrot.slane %v1478_v55, 2  ;;  %v741_v55 = vsel %vm210_vm9, %v1474_v39, %v740_v37 }
 0x139   :  { %v742_v32 = vsel %vm28_vm0, %v738_v43, %v739_v57 }
 0x13a   :  { %v1483_v3 = vpop.permute.xlu0 %750  ;;  %v1485_v13 = vpop.permute.xlu1 %752 }
 0x13b   :  { %v755_v22 = vrot.slane %v1483_v3, 2 }
 0x13d   :  { %v757_v6 = vsel %vm28_vm0, %v754_v53, %v755_v22 }
 0x13e   :  { %v1491_v44 = vpop.permute.xlu0 %546  ;;  %v1493_v47 = vpop.permute.xlu1 %548  ;;  %v758_v10 = vsel %vm228_vm10, %v1480_v42, %v757_v6  ;;  %v743_v42 = vsel %vm210_vm9, %v1476_v14, %v742_v32 }
 0x13f   :  { %v551_v50 = vrot.slane %v1491_v44, 2  ;;  %v552_v0 = vrot.slane %v1493_v47, 2 }
 0x141   :  { %v553_v46 = vsel %vm28_vm0, %v550_v17, %v551_v50 }
 0x142   :  { %v554_v2 = vsel %vm246_vm11, %v1446_v1, %v553_v46  ;;  %v1509_v31 = vpop.permute.xlu0 %765  ;;  %v1511_v45 = vpop.permute.xlu1 %767  ;;  %v691_v1 = vsel %vm28_vm0, %v687_v26, %v688_v21  ;;  %v756_v21 = vrot.slane %v1485_v13, 2 }
 0x143   :  { %v1514_v48 = vadd.f32 %v554_v2, %v1448_v58  ;;  %v721_v58 = vrot.slane %v1470_v34, 2  ;;  %v692_v60 = vsel %vm150_vm6, %v1460_v52, %v691_v1  ;;  %v771_v38 = vrot.slane %v1509_v31, 2 }
 0x144   :  { %v696_v52 = vadd.f32 %v692_v60, %v679_v4  ;;  %v772_v8 = vrot.slane %v1511_v45, 2  ;;  %v555_v2 = vsel %vm28_vm0, %v551_v50, %v552_v0 }
 0x145   :  { %v723_v9 = vsel %vm28_vm0, %v720_v51, %v721_v58  ;;  %v725_v17 = vsel %vm28_vm0, %v721_v58, %v722_v54  ;;  %v556_v50 = vsel %vm246_vm11, %v1491_v44, %v555_v2  ;;  %v759_v58 = vsel %vm28_vm0, %v755_v22, %v756_v21 }
 0x146   :  { %v1525_v56 = vpop.permute.xlu0 %769  ;;  %v568_v40 = vpop.permute.xlu1 %567  ;;  %v724_v20 = vsel %vm192_vm8, %v1468_v33, %v723_v9  ;;  %v713_v5 = vadd.f32 %v709_v16, %v696_v52  ;;  %v726_v47 = vsel %vm192_vm8, %v1470_v34, %v725_v17  ;;  %v774_v15 = vsel %vm28_vm0, %v771_v38, %v772_v8 }
 0x147   :  { %v573_v26 = vrot.slane %v568_v40, 2  ;;  %v729_v11 = vadd.f32 %v724_v20, %v712_v62  ;;  %v773_v51 = vrot.slane %v1525_v56, 2  ;;  %v775_v30 = vsel %vm246_vm11, %v1509_v31, %v774_v15 }
 0x148   :  { %v730_v1 = vadd.f32 %v726_v47, %v713_v5  ;;  %v560_v44 = vadd.f32 %v556_v50, %v1450_v23 }
 0x149   :  { %v746_v25 = vadd.f32 %v741_v55, %v729_v11  ;;  %v776_v53 = vsel %vm28_vm0, %v772_v8, %v773_v51 }
 0x14a   :  { %v570_v49 = vpop.permute.xlu0 %569  ;;  %v572_v59 = vpop.permute.xlu1 %571  ;;  %v747_v43 = vadd.f32 %v743_v42, %v730_v1  ;;  %v777_v38 = vsel %vm246_vm11, %v1511_v45, %v776_v53 }
 0x14b   :  { %v574_v46 = vrot.slane %v570_v49, 2  ;;  %v575_v33 = vrot.slane %v572_v59, 2  ;;  %v763_v19 = vadd.f32 %v758_v10, %v746_v25  ;;  %v760_v59 = vsel %vm228_vm10, %v1483_v3, %v759_v58 }
 0x14d   :  { %v576_v34 = vsel %vm28_vm0, %v573_v26, %v574_v46  ;;  %v578_v39 = vsel %vm28_vm0, %v574_v46, %v575_v33  ;;  %v780_v31 = vadd.f32 %v775_v30, %v763_v19 }
 0x14e   :  { %v783_v12 = vpop.permute.xlu0 %782  ;;  %v1551_v61 = vpop.permute.xlu1 %784  ;;  %v577_v60 = vsel %vm264_vm12, %v568_v40, %v576_v34  ;;  %v579_v27 = vsel %vm264_vm12, %v570_v49, %v578_v39 }
 0x14f   :  { %v788_v24 = vrot.slane %v783_v12, 2  ;;  %v789_v13 = vrot.slane %v1551_v61, 2  ;;  %v582_v40 = vadd.f32 %v577_v60, %v1514_v48  ;;  %v583_v22 = vadd.f32 %v579_v27, %v560_v44 }
 0x150   :  { %v764_v48 = vadd.f32 %v760_v59, %v747_v43 }
 0x151   :  { %v791_v56 = vsel %vm28_vm0, %v788_v24, %v789_v13 }
 0x152   :  { %v787_v35 = vpop.permute.xlu0 %786  ;;  %v591_v7 = vpop.permute.xlu1 %590  ;;  %v792_v23 = vsel %vm264_vm12, %v783_v12, %v791_v56  ;;  %v781_v5 = vadd.f32 %v777_v38, %v764_v48 }
 0x153   :  { %v596_v4 = vrot.slane %v591_v7, 2  ;;  %v790_v54 = vrot.slane %v787_v35, 2  ;;  %v797_v8 = vadd.f32 %v792_v23, %v780_v31 }
 0x155   :  { %v793_v52 = vsel %vm28_vm0, %v789_v13, %v790_v54 }
 0x156   :  { %v593_v29 = vpop.permute.xlu0 %592  ;;  %v595_v9 = vpop.permute.xlu1 %594  ;;  %v794_v46 = vsel %vm264_vm12, %v1551_v61, %v793_v52 }
 0x157   :  { %v597_v28 = vrot.slane %v593_v29, 2  ;;  %v598_v14 = vrot.slane %v595_v9, 2  ;;  %v798_v55 = vadd.f32 %v794_v46, %v781_v5 }
 0x159   :  { %v599_v49 = vsel %vm28_vm0, %v596_v4, %v597_v28  ;;  %v601_v36 = vsel %vm28_vm0, %v597_v28, %v598_v14 }
 0x15a   :  { %v600_v41 = vsel %vm282_vm13, %v591_v7, %v599_v49  ;;  %v602_v16 = vsel %vm282_vm13, %v593_v29, %v601_v36  ;;  %v800_v20 = vpop.permute.xlu0 %799  ;;  %v802_v3 = vpop.permute.xlu1 %801 }
 0x15b   :  { %v605_v17 = vadd.f32 %v600_v41, %v582_v40  ;;  %v606_v0 = vadd.f32 %v602_v16, %v583_v22  ;;  %v805_v37 = vrot.slane %v800_v20, 2  ;;  %v806_v57 = vrot.slane %v802_v3, 2 }
 0x15d   :  { %v607_v6 = vadd.f32 %v605_v17, %v1352_v63  ;;  %v608_v12 = vadd.f32 %v606_v0, %v1354_v18  ;;  %v808_v26 = vsel %vm28_vm0, %v805_v37, %v806_v57 }
 0x15e   :  { %v809_v33 = vsel %vm282_vm13, %v800_v20, %v808_v26  ;;  %v804_v62 = vpop.permute.xlu0 %803 }
 0x15f   :  { %825 = vst [vmem:[%s1616_s1 + $0x10] sm:$0xff] %v607_v6  ;;  %826 = vst [vmem:[%s1616_s1 + $0x18] sm:$0xff] %v608_v12  ;;  %v814_v45 = vadd.f32 %v809_v33, %v797_v8  ;;  %v807_v47 = vrot.slane %v804_v62, 2 }
 0x161   :  { %v816_v21 = vadd.f32 %v814_v45, %v1352_v63  ;;  %v810_v2 = vsel %vm28_vm0, %v806_v57, %v807_v47 }
 0x162   :  { %v811_v61 = vsel %vm282_vm13, %v802_v3, %v810_v2 }
 0x163   :  { %827 = vst [vmem:[%s1616_s1 + $0x20] sm:$0xff] %v816_v21  ;;  %v815_v11 = vadd.f32 %v811_v61, %v798_v55 }
 0x165   :  { %v817_v32 = vadd.f32 %v815_v11, %v1354_v18 }
 0x167   :  { %828 = vst [vmem:[%s1616_s1 + $0x28] sm:$0xff] %v817_v32 }

// kernel: clap_audio_embedding.3
= control target key start
LH: loop header
LB: loop body
LE: loop exit
PB: predicated region body
PF: predicated region fallthrough
CT: control target
= control target key end

     0   :  { %vm880_vm0 = vcmask 1041409   ;;  %s3666_s1 = inlined_call_operand.vmem [shape: bf16[256,512], index: 1, kind: input, shape index: {}]   ;;  %s3667_s0 = inlined_call_operand.vmem [shape: bf16[2,32,256], index: 0, kind: input, shape index: {}]   ;;  %s3668_s2 = inlined_call_operand.vmem [shape: bf16[256,128], index: 2, kind: input, shape index: {}]   ;;  %s3669_s3 = inlined_call_operand.vmem [shape: bf16[128,512], index: 3, kind: input, shape index: {}]   ;;  %s3670_s5 = inlined_call_operand.vmem [shape: bf16[512,512], index: 5, kind: input, shape index: {}]   ;;  %s3671_s4 = inlined_call_operand.vmem [shape: f32[1,512], index: 4, kind: input, shape index: {}]   ;;  %s3672_s6 = inlined_call_operand.vmem [shape: f32[1,512], index: 6, kind: input, shape index: {}]   ;;  %s3673_s7 = inlined_call_operand.vmem [shape: f32[2,512], index: 7, kind: output, shape index: {}]  }
   0x1   :  { %v2478_v0 = vld [vmem:[%s3666_s1 + $0x4] ss:$16 sps:$4 sm:$0xff]   ;;  %v2480_v1 = vld [vmem:[%s3666_s1 + $0xc] ss:$16 sps:$4 sm:$0xff]   ;;  %v2482_v2 = vld [vmem:[%s3666_s1] ss:$16 sps:$4 sm:$0xff]  }
   0x2   :  { %464 = vmatprep.subr.bf16.mxu0 %v2478_v0  ;;  %v2483_v3 = vld [vmem:[%s3666_s1 + $0x8] ss:$16 sps:$4 sm:$0xff]   ;;  %537 = vmatprep.subr.bf16.mxu1 %v2480_v1  ;;  %v2484_v4 = vld [vmem:[%s3666_s1 + $0x24] ss:$16 sps:$4 sm:$0xff]   ;;  %v2486_v5 = vld [vmem:[%s3666_s1 + $0x2c] ss:$16 sps:$4 sm:$0xff]  }
   0x3   :  { %465 = vmatpush1.bf16.msra.mxu0 %v2482_v2  ;;  %538 = vmatpush1.bf16.msra.mxu1 %v2483_v3  ;;  %v2488_v6 = vld [vmem:[%s3666_s1 + $0x20] ss:$16 sps:$4 sm:$0xff]   ;;  %v2489_v7 = vld [vmem:[%s3666_s1 + $0x28] ss:$16 sps:$4 sm:$0xff]   ;;  %v2490_v8 = vld [vmem:[%s3666_s1 + $0x44] ss:$16 sps:$4 sm:$0xff]  }
   0x4   :  { %466 = vmatprep.subr.bf16.mxu0 %v2484_v4  ;;  %539 = vmatprep.subr.bf16.mxu1 %v2486_v5  ;;  %v2492_v9 = vld [vmem:[%s3666_s1 + $0x4c] ss:$16 sps:$4 sm:$0xff]   ;;  %v2494_v10 = vld [vmem:[%s3666_s1 + $0x40] ss:$16 sps:$4 sm:$0xff]   ;;  %v2495_v11 = vld [vmem:[%s3666_s1 + $0x48] ss:$16 sps:$4 sm:$0xff]  }
   0x5   :  { %v2496_v12 = vld [vmem:[%s3666_s1 + $0x64] ss:$16 sps:$4 sm:$0xff]   ;;  %v2498_v13 = vld [vmem:[%s3666_s1 + $0x6c] ss:$16 sps:$4 sm:$0xff]   ;;  %v2500_v14 = vld [vmem:[%s3666_s1 + $0x60] ss:$16 sps:$4 sm:$0xff]  }
   0x6   :  { %v2501_v15 = vld [vmem:[%s3666_s1 + $0x68] ss:$16 sps:$4 sm:$0xff]   ;;  %v2502_v16 = vld [vmem:[%s3666_s1 + $0x84] ss:$16 sps:$4 sm:$0xff]   ;;  %v2504_v17 = vld [vmem:[%s3666_s1 + $0x8c] ss:$16 sps:$4 sm:$0xff]  }
   0x7   :  { %467 = vmatpush1.bf16.msra.mxu0 %v2488_v6  ;;  %540 = vmatpush1.bf16.msra.mxu1 %v2489_v7  ;;  %v2506_v18 = vld [vmem:[%s3666_s1 + $0x80] ss:$16 sps:$4 sm:$0xff]   ;;  %v2507_v19 = vld [vmem:[%s3666_s1 + $0x88] ss:$16 sps:$4 sm:$0xff]   ;;  %v2508_v20 = vld [vmem:[%s3666_s1 + $0xa4] ss:$16 sps:$4 sm:$0xff]  }
   0x8   :  { %468 = vmatprep.subr.bf16.mxu0 %v2490_v8  ;;  %541 = vmatprep.subr.bf16.mxu1 %v2492_v9  ;;  %v2510_v21 = vld [vmem:[%s3666_s1 + $0xac] ss:$16 sps:$4 sm:$0xff]   ;;  %v2512_v22 = vld [vmem:[%s3666_s1 + $0xa0] ss:$16 sps:$4 sm:$0xff]   ;;  %v2513_v23 = vld [vmem:[%s3666_s1 + $0xa8] ss:$16 sps:$4 sm:$0xff]  }
   0x9   :  { %v2514_v24 = vld [vmem:[%s3666_s1 + $0xc4] ss:$16 sps:$4 sm:$0xff]   ;;  %v2516_v25 = vld [vmem:[%s3666_s1 + $0xcc] ss:$16 sps:$4 sm:$0xff]   ;;  %v2518_v26 = vld [vmem:[%s3666_s1 + $0xc0] ss:$16 sps:$4 sm:$0xff]  }
   0xa   :  { %v2519_v27 = vld [vmem:[%s3666_s1 + $0xc8] ss:$16 sps:$4 sm:$0xff]   ;;  %v2520_v28 = vld [vmem:[%s3666_s1 + $0xe4] ss:$16 sps:$4 sm:$0xff]   ;;  %v2522_v29 = vld [vmem:[%s3666_s1 + $0xec] ss:$16 sps:$4 sm:$0xff]  }
   0xb   :  { %469 = vmatpush1.bf16.msra.mxu0 %v2494_v10  ;;  %542 = vmatpush1.bf16.msra.mxu1 %v2495_v11  ;;  %v2524_v30 = vld [vmem:[%s3666_s1 + $0xe0] ss:$16 sps:$4 sm:$0xff]   ;;  %v2525_v31 = vld [vmem:[%s3666_s1 + $0xe8] ss:$16 sps:$4 sm:$0xff]   ;;  %v2526_v32 = vld [vmem:[%s3666_s1 + $0x104] ss:$16 sps:$4 sm:$0xff]  }
   0xc   :  { %470 = vmatprep.subr.bf16.mxu0 %v2496_v12  ;;  %543 = vmatprep.subr.bf16.mxu1 %v2498_v13  ;;  %v2528_v33 = vld [vmem:[%s3666_s1 + $0x10c] ss:$16 sps:$4 sm:$0xff]   ;;  %v2530_v34 = vld [vmem:[%s3666_s1 + $0x100] ss:$16 sps:$4 sm:$0xff]   ;;  %v2531_v35 = vld [vmem:[%s3666_s1 + $0x108] ss:$16 sps:$4 sm:$0xff]  }
   0xd   :  { %v2532_v36 = vld [vmem:[%s3666_s1 + $0x124] ss:$16 sps:$4 sm:$0xff]   ;;  %v2534_v37 = vld [vmem:[%s3666_s1 + $0x12c] ss:$16 sps:$4 sm:$0xff]   ;;  %v2536_v38 = vld [vmem:[%s3666_s1 + $0x120] ss:$16 sps:$4 sm:$0xff]  }
   0xe   :  { %v2537_v39 = vld [vmem:[%s3666_s1 + $0x128] ss:$16 sps:$4 sm:$0xff]   ;;  %v2538_v40 = vld [vmem:[%s3666_s1 + $0x144] ss:$16 sps:$4 sm:$0xff]   ;;  %v2540_v41 = vld [vmem:[%s3666_s1 + $0x14c] ss:$16 sps:$4 sm:$0xff]  }
   0xf   :  { %471 = vmatpush1.bf16.msra.mxu0 %v2500_v14  ;;  %544 = vmatpush1.bf16.msra.mxu1 %v2501_v15  ;;  %v2542_v42 = vld [vmem:[%s3666_s1 + $0x140] ss:$16 sps:$4 sm:$0xff]   ;;  %v2543_v43 = vld [vmem:[%s3666_s1 + $0x148] ss:$16 sps:$4 sm:$0xff]   ;;  %v2544_v44 = vld [vmem:[%s3666_s1 + $0x164] ss:$16 sps:$4 sm:$0xff]  }
  0x10   :  { %472 = vmatprep.subr.bf16.mxu0 %v2502_v16  ;;  %545 = vmatprep.subr.bf16.mxu1 %v2504_v17  ;;  %v2546_v45 = vld [vmem:[%s3666_s1 + $0x16c] ss:$16 sps:$4 sm:$0xff]   ;;  %v2548_v46 = vld [vmem:[%s3666_s1 + $0x160] ss:$16 sps:$4 sm:$0xff]   ;;  %v2549_v47 = vld [vmem:[%s3666_s1 + $0x168] ss:$16 sps:$4 sm:$0xff]  }
  0x11   :  { %v2576_v48 = vld [vmem:[%s3667_s0 + $0x4] ss:$8 sps:$4 sm:$0xff]   ;;  %v2554_v51 = vld [vmem:[%s3666_s1 + $0x180] ss:$16 sps:$4 sm:$0xff]   ;;  %v2555_v52 = vld [vmem:[%s3666_s1 + $0x188] ss:$16 sps:$4 sm:$0xff]  }
  0x12   :  { %v2550_v49 = vld [vmem:[%s3666_s1 + $0x184] ss:$16 sps:$4 sm:$0xff]   ;;  %v2552_v50 = vld [vmem:[%s3666_s1 + $0x18c] ss:$16 sps:$4 sm:$0xff]   ;;  %496 = vmatprep.mubr.bf16.mxu0 %v2576_v48  ;;  %569 = vmatprep.mubr.bf16.mxu1 %v2576_v48  ;;  %v2560_v55 = vld [vmem:[%s3666_s1 + $0x1a0] ss:$16 sps:$4 sm:$0xff]  }
  0x13   :  { %473 = vmatpush1.bf16.msra.mxu0 %v2506_v18  ;;  %546 = vmatpush1.bf16.msra.mxu1 %v2507_v19  ;;  %v2556_v53 = vld [vmem:[%s3666_s1 + $0x1a4] ss:$16 sps:$4 sm:$0xff]   ;;  %v2558_v54 = vld [vmem:[%s3666_s1 + $0x1ac] ss:$16 sps:$4 sm:$0xff]   ;;  %v2561_v56 = vld [vmem:[%s3666_s1 + $0x1a8] ss:$16 sps:$4 sm:$0xff]  }
  0x14   :  { %474 = vmatprep.subr.bf16.mxu0 %v2508_v20  ;;  %547 = vmatprep.subr.bf16.mxu1 %v2510_v21  ;;  %v2562_v57 = vld [vmem:[%s3666_s1 + $0x1c4] ss:$16 sps:$4 sm:$0xff]   ;;  %v2564_v58 = vld [vmem:[%s3666_s1 + $0x1cc] ss:$16 sps:$4 sm:$0xff]   ;;  %v2566_v59 = vld [vmem:[%s3666_s1 + $0x1c0] ss:$16 sps:$4 sm:$0xff]  }
  0x15   :  { %v2567_v60 = vld [vmem:[%s3666_s1 + $0x1c8] ss:$16 sps:$4 sm:$0xff]   ;;  %v2568_v61 = vld [vmem:[%s3666_s1 + $0x1e4] ss:$16 sps:$4 sm:$0xff]   ;;  %v2570_v62 = vld [vmem:[%s3666_s1 + $0x1ec] ss:$16 sps:$4 sm:$0xff]  }
  0x16   :  { %v2572_v63 = vld [vmem:[%s3666_s1 + $0x1e0] ss:$16 sps:$4 sm:$0xff]   ;;  %v2573_v0 = vld [vmem:[%s3666_s1 + $0x1e8] ss:$16 sps:$4 sm:$0xff]   ;;  %v2577_v3 = vld [vmem:[%s3667_s0 + $0x14] ss:$8 sps:$4 sm:$0xff]  }
  0x17   :  { %475 = vmatpush1.bf16.msra.mxu0 %v2512_v22  ;;  %548 = vmatpush1.bf16.msra.mxu1 %v2513_v23  ;;  %v2586_v1 = vld [vmem:[%s3668_s2 + $0x40] sm:$0xff]   ;;  %v2588_v5 = vld [vmem:[%s3668_s2 + $0x48] sm:$0xff]   ;;  %v2590_v7 = vld [vmem:[%s3668_s2 + $0x50] sm:$0xff]  }
  0x18   :  { %476 = vmatprep.subr.bf16.mxu0 %v2514_v24  ;;  %549 = vmatprep.subr.bf16.mxu1 %v2516_v25  ;;  %v2574_v2 = vld [vmem:[%s3667_s0] ss:$8 sps:$4 sm:$0xff]   ;;  %v2579_v8 = vld [vmem:[%s3667_s0 + $0x10] ss:$8 sps:$4 sm:$0xff]   ;;  %v2580_v9 = vld [vmem:[%s3667_s0 + $0x24] ss:$8 sps:$4 sm:$0xff]  }
  0x19   :  { %v2587_v4 = vld [vmem:[%s3668_s2] sm:$0xff]   ;;  %v2589_v6 = vld [vmem:[%s3668_s2 + $0x8] sm:$0xff]   ;;  %v2591_v10 = vld [vmem:[%s3668_s2 + $0x10] sm:$0xff]  }
  0x1a   :  { %v2592_v11 = vld [vmem:[%s3668_s2 + $0x58] sm:$0xff]   ;;  %v2594_v13 = vld [vmem:[%s3668_s2 + $0x60] sm:$0xff]   ;;  %v2596_v17 = vld [vmem:[%s3668_s2 + $0x68] sm:$0xff]  }
  0x1b   :  { %477 = vmatpush1.bf16.msra.mxu0 %v2518_v26  ;;  %550 = vmatpush1.bf16.msra.mxu1 %v2519_v27  ;;  %v2593_v12 = vld [vmem:[%s3668_s2 + $0x18] sm:$0xff]   ;;  %v2582_v14 = vld [vmem:[%s3667_s0 + $0x20] ss:$8 sps:$4 sm:$0xff]   ;;  %v2598_v20 = vld [vmem:[%s3668_s2 + $0x70] sm:$0xff]  }
  0x1c   :  { %478 = vmatprep.subr.bf16.mxu0 %v2520_v28  ;;  %551 = vmatprep.subr.bf16.mxu1 %v2522_v29  ;;  %v2583_v15 = vld [vmem:[%s3667_s0 + $0x34] ss:$8 sps:$4 sm:$0xff]   ;;  %v2595_v16 = vld [vmem:[%s3668_s2 + $0x20] sm:$0xff]   ;;  %v2597_v18 = vld [vmem:[%s3668_s2 + $0x28] sm:$0xff]  }
  0x1d   :  { %v2585_v19 = vld [vmem:[%s3667_s0 + $0x30] ss:$8 sps:$4 sm:$0xff]  }
  0x1e   :  { %v2599_v21 = vld [vmem:[%s3668_s2 + $0x30] sm:$0xff]   ;;  %v2600_v22 = vld [vmem:[%s3668_s2 + $0x78] sm:$0xff]  }
  0x1f   :  { %479 = vmatpush1.bf16.msra.mxu0 %v2524_v30  ;;  %552 = vmatpush1.bf16.msra.mxu1 %v2525_v31  ;;  %v2601_v23 = vld [vmem:[%s3668_s2 + $0x38] sm:$0xff]  }
  0x20   :  { %480 = vmatprep.subr.bf16.mxu0 %v2526_v32  ;;  %553 = vmatprep.subr.bf16.mxu1 %v2528_v33 }
  0x23   :  { %481 = vmatpush1.bf16.msra.mxu0 %v2530_v34  ;;  %554 = vmatpush1.bf16.msra.mxu1 %v2531_v35 }
  0x24   :  { %482 = vmatprep.subr.bf16.mxu0 %v2532_v36  ;;  %555 = vmatprep.subr.bf16.mxu1 %v2534_v37 }
  0x27   :  { %483 = vmatpush1.bf16.msra.mxu0 %v2536_v38  ;;  %556 = vmatpush1.bf16.msra.mxu1 %v2537_v39 }
  0x28   :  { %484 = vmatprep.subr.bf16.mxu0 %v2538_v40  ;;  %557 = vmatprep.subr.bf16.mxu1 %v2540_v41 }
  0x2b   :  { %485 = vmatpush1.bf16.msra.mxu0 %v2542_v42  ;;  %558 = vmatpush1.bf16.msra.mxu1 %v2543_v43 }
  0x2c   :  { %486 = vmatprep.subr.bf16.mxu0 %v2544_v44  ;;  %559 = vmatprep.subr.bf16.mxu1 %v2546_v45 }
  0x2f   :  { %487 = vmatpush1.bf16.msra.mxu0 %v2548_v46  ;;  %560 = vmatpush1.bf16.msra.mxu1 %v2549_v47 }
  0x30   :  { %488 = vmatprep.subr.bf16.mxu0 %v2550_v49  ;;  %561 = vmatprep.subr.bf16.mxu1 %v2552_v50 }
  0x33   :  { %489 = vmatpush1.bf16.msra.mxu0 %v2554_v51  ;;  %562 = vmatpush1.bf16.msra.mxu1 %v2555_v52 }
  0x34   :  { %490 = vmatprep.subr.bf16.mxu0 %v2556_v53  ;;  %563 = vmatprep.subr.bf16.mxu1 %v2558_v54 }
  0x37   :  { %491 = vmatpush1.bf16.msra.mxu0 %v2560_v55  ;;  %564 = vmatpush1.bf16.msra.mxu1 %v2561_v56 }
  0x38   :  { %492 = vmatprep.subr.bf16.mxu0 %v2562_v57  ;;  %565 = vmatprep.subr.bf16.mxu1 %v2564_v58 }
  0x3b   :  { %493 = vmatpush1.bf16.msra.mxu0 %v2566_v59  ;;  %566 = vmatpush1.bf16.msra.mxu1 %v2567_v60 }
  0x3c   :  { %494 = vmatprep.subr.bf16.mxu0 %v2568_v61  ;;  %567 = vmatprep.subr.bf16.mxu1 %v2570_v62 }
  0x3f   :  { %495 = vmatpush1.bf16.msra.mxu0 %v2572_v63  ;;  %568 = vmatpush1.bf16.msra.mxu1 %v2573_v0 }
  0x40   :  { %2423 = vmatprep.subr.bf16.mxu0 %v2586_v1 }
  0x42   :  { %497 = vmatmul.mubr.bf16.vlgmr.msra.gmra.mrb[0].mxu0 %v2574_v2  ;;  %570 = vmatmul.mubr.bf16.vlgmr.msra.gmra.mrb[0].mxu1 %v2574_v2 }
  0x43   :  { %506 = vmatprep.mubr.bf16.mxu0 %v2577_v3  ;;  %579 = vmatprep.mubr.bf16.mxu1 %v2577_v3 }
  0x44   :  { %2424 = vmatpush3.bf16.msra.mxu0 %v2587_v4 }
  0x45   :  { %2425 = vmatprep.subr.bf16.mxu0 %v2588_v5 }
  0x48   :  { %2426 = vmatpush3.bf16.msra.mxu0 %v2589_v6 }
  0x49   :  { %2427 = vmatprep.subr.bf16.mxu0 %v2590_v7 }
  0x4a   :  { %507 = vmatmul.mubr.bf16.gmra.mrb[4].mxu0 %v2579_v8  ;;  %580 = vmatmul.mubr.bf16.gmra.mrb[4].mxu1 %v2579_v8 }
  0x4b   :  { %516 = vmatprep.mubr.bf16.mxu0 %v2580_v9  ;;  %589 = vmatprep.mubr.bf16.mxu1 %v2580_v9 }
  0x4c   :  { %2428 = vmatpush3.bf16.msra.mxu0 %v2591_v10 }
  0x4d   :  { %2429 = vmatprep.subr.bf16.mxu0 %v2592_v11 }
  0x50   :  { %2430 = vmatpush3.bf16.msra.mxu0 %v2593_v12 }
  0x51   :  { %2431 = vmatprep.subr.bf16.mxu0 %v2594_v13 }
  0x52   :  { %517 = vmatmul.mubr.bf16.gmra.mrb[8].mxu0 %v2582_v14  ;;  %590 = vmatmul.mubr.bf16.gmra.mrb[8].mxu1 %v2582_v14 }
  0x53   :  { %526 = vmatprep.mubr.bf16.mxu0 %v2583_v15  ;;  %599 = vmatprep.mubr.bf16.mxu1 %v2583_v15 }
  0x54   :  { %2432 = vmatpush3.bf16.msra.mxu0 %v2595_v16 }
  0x55   :  { %2433 = vmatprep.subr.bf16.mxu0 %v2596_v17 }
  0x58   :  { %2434 = vmatpush3.bf16.msra.mxu0 %v2597_v18 }
  0x59   :  { %2435 = vmatprep.subr.bf16.mxu0 %v2598_v20 }
  0x5a   :  { %527 = vmatmul.mubr.bf16.gmra.mrb[12].mxu0 %v2585_v19  ;;  %600 = vmatmul.mubr.bf16.gmra.mrb[12].mxu1 %v2585_v19 }
  0x5c   :  { %2436 = vmatpush3.bf16.msra.mxu0 %v2599_v21 }
  0x5d   :  { %2437 = vmatprep.subr.bf16.mxu0 %v2600_v22 }
  0x60   :  { %2438 = vmatpush3.bf16.msra.mxu0 %v2601_v23 }
 0x115   :  { %v498_v24 = vpop.f32.mrb[0].mxu0  ;;  %v571_v25 = vpop.f32.mrb[0].mxu1 }
 0x116   :  { %v610_v26 = vmul.f32 %v498_v24, %v498_v24  ;;  %v626_v27 = vmul.f32 %v571_v25, %v571_v25  ;;  %v500_v28 = vpop.f32.mrb[1].mxu0  ;;  %v573_v29 = vpop.f32.mrb[1].mxu1 }
 0x117   :  { %v611_v30 = vmul.f32 %v500_v28, %v500_v28  ;;  %v627_v31 = vmul.f32 %v573_v29, %v573_v29  ;;  %v502_v32 = vpop.f32.mrb[2].mxu0  ;;  %v575_v33 = vpop.f32.mrb[2].mxu1 }
 0x118   :  { %v642_v34 = vadd.f32 %v626_v27, %v610_v26  ;;  %v612_v35 = vmul.f32 %v502_v32, %v502_v32  ;;  %v628_v36 = vmul.f32 %v575_v33, %v575_v33  ;;  %v504_v37 = vpop.f32.mrb[3].mxu0  ;;  %v577_v38 = vpop.f32.mrb[3].mxu1 }
 0x119   :  { %v643_v39 = vadd.f32 %v627_v31, %v611_v30  ;;  %v613_v40 = vmul.f32 %v504_v37, %v504_v37  ;;  %v629_v41 = vmul.f32 %v577_v38, %v577_v38 }
 0x11a   :  { %v644_v42 = vadd.f32 %v628_v36, %v612_v35 }
 0x11b   :  { %v645_v43 = vadd.f32 %v629_v41, %v613_v40 }
 0x11c   :  { %v658_v44 = vpack.c.bf16 %v644_v42, %v642_v34 }
 0x11d   :  { %v508_v45 = vpop.f32.mrb[4].mxu0  ;;  %v581_v46 = vpop.f32.mrb[4].mxu1  ;;  %v659_v47 = vpack.c.bf16 %v645_v43, %v643_v39 }
 0x11e   :  { %v614_v48 = vmul.f32 %v508_v45, %v508_v45  ;;  %v630_v49 = vmul.f32 %v581_v46, %v581_v46  ;;  %v510_v50 = vpop.f32.mrb[5].mxu0  ;;  %v583_v51 = vpop.f32.mrb[5].mxu1 }
 0x11f   :  { %v615_v52 = vmul.f32 %v510_v50, %v510_v50  ;;  %v631_v53 = vmul.f32 %v583_v51, %v583_v51  ;;  %v512_v54 = vpop.f32.mrb[6].mxu0  ;;  %v585_v55 = vpop.f32.mrb[6].mxu1  ;;  %826 = vmatprep.mubr.bf16.mxu0 %v659_v47  ;;  %v2605_v50 = vld [vmem:[%s3669_s3 + $0x8] ss:$16 sps:$4 sm:$0xff]   ;;  %v2607_v51 = vld [vmem:[%s3669_s3 + $0xc] ss:$16 sps:$4 sm:$0xff]  }
 0x120   :  { %v646_v56 = vadd.f32 %v630_v49, %v614_v48  ;;  %v616_v57 = vmul.f32 %v512_v54, %v512_v54  ;;  %v632_v58 = vmul.f32 %v585_v55, %v585_v55  ;;  %v514_v59 = vpop.f32.mrb[7].mxu0  ;;  %v587_v60 = vpop.f32.mrb[7].mxu1  ;;  %827 = vmatmul.mubr.bf16.vlgmr.msra.gmra.mrb[16].mxu0 %v658_v44  ;;  %v2604_v48 = vld [vmem:[%s3669_s3 + $0x4] ss:$16 sps:$4 sm:$0xff]   ;;  %v2602_v49 = vld [vmem:[%s3669_s3] ss:$16 sps:$4 sm:$0xff]   ;;  %1145 = vmatprep.subr.bf16.mxu0 %v2607_v51 }
 0x121   :  { %v647_v61 = vadd.f32 %v631_v53, %v615_v52  ;;  %v617_v62 = vmul.f32 %v514_v59, %v514_v59  ;;  %v633_v63 = vmul.f32 %v587_v60, %v587_v60  ;;  %1104 = vmatprep.subr.bf16.mxu1 %v2604_v48  ;;  %v2610_v52 = vld [vmem:[%s3669_s3 + $0x24] ss:$16 sps:$4 sm:$0xff]   ;;  %v2613_v53 = vld [vmem:[%s3669_s3 + $0x2c] ss:$16 sps:$4 sm:$0xff]   ;;  %1146 = vmatpush1.bf16.msra.mxu0 %v2605_v50  ;;  %v2608_v54 = vld [vmem:[%s3669_s3 + $0x20] ss:$16 sps:$4 sm:$0xff]  }
 0x122   :  { %v648_v0 = vadd.f32 %v632_v58, %v616_v57  ;;  %1105 = vmatpush1.bf16.msra.mxu1 %v2602_v49  ;;  %v2611_v55 = vld [vmem:[%s3669_s3 + $0x28] ss:$16 sps:$4 sm:$0xff]   ;;  %1147 = vmatprep.subr.bf16.mxu0 %v2613_v53  ;;  %v2616_v57 = vld [vmem:[%s3669_s3 + $0x44] ss:$16 sps:$4 sm:$0xff]   ;;  %v2619_v58 = vld [vmem:[%s3669_s3 + $0x4c] ss:$16 sps:$4 sm:$0xff]  }
 0x123   :  { %v649_v1 = vadd.f32 %v633_v63, %v617_v62  ;;  %1106 = vmatprep.subr.bf16.mxu1 %v2610_v52  ;;  %v2614_v59 = vld [vmem:[%s3669_s3 + $0x40] ss:$16 sps:$4 sm:$0xff]   ;;  %v2617_v60 = vld [vmem:[%s3669_s3 + $0x48] ss:$16 sps:$4 sm:$0xff]   ;;  %v2625_v62 = vld [vmem:[%s3669_s3 + $0x6c] ss:$16 sps:$4 sm:$0xff]  }
 0x124   :  { %v660_v2 = vpack.c.bf16 %v648_v0, %v646_v56  ;;  %v2842_v56 = vmov 0.0   ;;  %v2620_v63 = vld [vmem:[%s3669_s3 + $0x60] ss:$16 sps:$4 sm:$0xff]   ;;  %v2623_v0 = vld [vmem:[%s3669_s3 + $0x68] ss:$16 sps:$4 sm:$0xff]  }
 0x125   :  { %v518_v3 = vpop.f32.mrb[8].mxu0  ;;  %v591_v4 = vpop.f32.mrb[8].mxu1  ;;  %v661_v5 = vpack.c.bf16 %v649_v1, %v647_v61  ;;  %31 = vst [vmem:[#allocation2] sm:$0x3] %v2842_v56  ;;  %1148 = vmatpush1.bf16.msra.mxu0 %v2611_v55  ;;  %v2622_v61 = vld [vmem:[%s3669_s3 + $0x64] ss:$16 sps:$4 sm:$0xff]  }
 0x126   :  { %v618_v6 = vmul.f32 %v518_v3, %v518_v3  ;;  %v634_v7 = vmul.f32 %v591_v4, %v591_v4  ;;  %v520_v8 = vpop.f32.mrb[9].mxu0  ;;  %v593_v9 = vpop.f32.mrb[9].mxu1  ;;  %1107 = vmatpush1.bf16.msra.mxu1 %v2608_v54  ;;  %1149 = vmatprep.subr.bf16.mxu0 %v2619_v58  ;;  %v2628_v1 = vld [vmem:[%s3669_s3 + $0x84] ss:$16 sps:$4 sm:$0xff]   ;;  %v2626_v3 = vld [vmem:[%s3669_s3 + $0x80] ss:$16 sps:$4 sm:$0xff]  }
 0x127   :  { %v619_v10 = vmul.f32 %v520_v8, %v520_v8  ;;  %v635_v11 = vmul.f32 %v593_v9, %v593_v9  ;;  %v522_v12 = vpop.f32.mrb[10].mxu0  ;;  %v595_v13 = vpop.f32.mrb[10].mxu1  ;;  %834 = vmatprep.mubr.bf16.mxu0 %v661_v5  ;;  %1108 = vmatprep.subr.bf16.mxu1 %v2616_v57  ;;  %v2629_v4 = vld [vmem:[%s3669_s3 + $0x88] ss:$16 sps:$4 sm:$0xff]   ;;  %v2634_v5 = vld [vmem:[%s3669_s3 + $0xa4] ss:$16 sps:$4 sm:$0xff]  }
 0x128   :  { %v650_v14 = vadd.f32 %v634_v7, %v618_v6  ;;  %v620_v15 = vmul.f32 %v522_v12, %v522_v12  ;;  %v636_v16 = vmul.f32 %v595_v13, %v595_v13  ;;  %v524_v17 = vpop.f32.mrb[11].mxu0  ;;  %v597_v18 = vpop.f32.mrb[11].mxu1  ;;  %835 = vmatmul.mubr.bf16.gmra.mrb[20].mxu0 %v660_v2  ;;  %v2631_v2 = vld [vmem:[%s3669_s3 + $0x8c] ss:$16 sps:$4 sm:$0xff]   ;;  %v2632_v7 = vld [vmem:[%s3669_s3 + $0xa0] ss:$16 sps:$4 sm:$0xff]  }
 0x129   :  { %v651_v19 = vadd.f32 %v635_v11, %v619_v10  ;;  %v621_v20 = vmul.f32 %v524_v17, %v524_v17  ;;  %v637_v21 = vmul.f32 %v597_v18, %v597_v18  ;;  %1150 = vmatpush1.bf16.msra.mxu0 %v2617_v60  ;;  %v2637_v6 = vld [vmem:[%s3669_s3 + $0xac] ss:$16 sps:$4 sm:$0xff]   ;;  %v2635_v8 = vld [vmem:[%s3669_s3 + $0xa8] ss:$16 sps:$4 sm:$0xff]   ;;  %v2638_v9 = vld [vmem:[%s3669_s3 + $0xc0] ss:$16 sps:$4 sm:$0xff]  }
 0x12a   :  { %v652_v22 = vadd.f32 %v636_v16, %v620_v15  ;;  %1109 = vmatpush1.bf16.msra.mxu1 %v2614_v59  ;;  %1151 = vmatprep.subr.bf16.mxu0 %v2625_v62  ;;  %v2640_v10 = vld [vmem:[%s3669_s3 + $0xc4] ss:$16 sps:$4 sm:$0xff]   ;;  %v2641_v11 = vld [vmem:[%s3669_s3 + $0xc8] ss:$16 sps:$4 sm:$0xff]   ;;  %v2643_v12 = vld [vmem:[%s3669_s3 + $0xcc] ss:$16 sps:$4 sm:$0xff]  }
 0x12b   :  { %v653_v23 = vadd.f32 %v637_v21, %v621_v20  ;;  %1110 = vmatprep.subr.bf16.mxu1 %v2622_v61  ;;  %v2646_v13 = vld [vmem:[%s3669_s3 + $0xe4] ss:$16 sps:$4 sm:$0xff]   ;;  %v2644_v15 = vld [vmem:[%s3669_s3 + $0xe0] ss:$16 sps:$4 sm:$0xff]   ;;  %v2843_v16 = vmov 0  }
 0x12c   :  { %v662_v24 = vpack.c.bf16 %v652_v22, %v650_v14  ;;  %v2649_v14 = vld [vmem:[%s3669_s3 + $0xec] ss:$16 sps:$4 sm:$0xff]   ;;  %1136 = vmatprep.mubr.bf16.mxu1 %v2843_v16  ;;  %v2647_v17 = vld [vmem:[%s3669_s3 + $0xe8] ss:$16 sps:$4 sm:$0xff]   ;;  %v2652_v18 = vld [vmem:[%s3670_s5 + $0x4] ss:$16 sps:$4 sm:$0xff]  }
 0x12d   :  { %v528_v25 = vpop.f32.mrb[12].mxu0  ;;  %v601_v26 = vpop.f32.mrb[12].mxu1  ;;  %v663_v27 = vpack.c.bf16 %v653_v23, %v651_v19  ;;  %1152 = vmatpush1.bf16.msra.mxu0 %v2623_v0  ;;  %v2655_v19 = vld [vmem:[%s3670_s5 + $0xc] ss:$16 sps:$4 sm:$0xff]   ;;  %v859_v61 = vld [vmem:[#allocation2] sm:$0x3] }
 0x12e   :  { %v622_v28 = vmul.f32 %v528_v25, %v528_v25  ;;  %v638_v29 = vmul.f32 %v601_v26, %v601_v26  ;;  %v530_v30 = vpop.f32.mrb[13].mxu0  ;;  %v603_v31 = vpop.f32.mrb[13].mxu1  ;;  %1111 = vmatpush1.bf16.msra.mxu1 %v2620_v63  ;;  %1153 = vmatprep.subr.bf16.mxu0 %v2631_v2  ;;  %v2650_v2 = vld [vmem:[%s3670_s5] ss:$16 sps:$4 sm:$0xff]  }
 0x12f   :  { %v623_v32 = vmul.f32 %v530_v30, %v530_v30  ;;  %v639_v33 = vmul.f32 %v603_v31, %v603_v31  ;;  %v532_v34 = vpop.f32.mrb[14].mxu0  ;;  %v605_v35 = vpop.f32.mrb[14].mxu1  ;;  %842 = vmatprep.mubr.bf16.mxu0 %v663_v27  ;;  %1112 = vmatprep.subr.bf16.mxu1 %v2628_v1 }
 0x130   :  { %v654_v36 = vadd.f32 %v638_v29, %v622_v28  ;;  %v624_v37 = vmul.f32 %v532_v34, %v532_v34  ;;  %v640_v38 = vmul.f32 %v605_v35, %v605_v35  ;;  %v534_v39 = vpop.f32.mrb[15].mxu0  ;;  %v607_v40 = vpop.f32.mrb[15].mxu1  ;;  %843 = vmatmul.mubr.bf16.gmra.mrb[24].mxu0 %v662_v24 }
 0x131   :  { %v655_v41 = vadd.f32 %v639_v33, %v623_v32  ;;  %v625_v42 = vmul.f32 %v534_v39, %v534_v39  ;;  %v641_v43 = vmul.f32 %v607_v40, %v607_v40  ;;  %1154 = vmatpush1.bf16.msra.mxu0 %v2629_v4 }
 0x132   :  { %v656_v44 = vadd.f32 %v640_v38, %v624_v37  ;;  %1113 = vmatpush1.bf16.msra.mxu1 %v2626_v3  ;;  %1155 = vmatprep.subr.bf16.mxu0 %v2637_v6  ;;  %v2653_v3 = vld [vmem:[%s3670_s5 + $0x8] ss:$16 sps:$4 sm:$0xff]   ;;  %v2661_v6 = vld [vmem:[%s3670_s5 + $0x2c] ss:$16 sps:$4 sm:$0xff]  }
 0x133   :  { %v657_v45 = vadd.f32 %v641_v43, %v625_v42  ;;  %1114 = vmatprep.subr.bf16.mxu1 %v2634_v5  ;;  %v2658_v5 = vld [vmem:[%s3670_s5 + $0x24] ss:$16 sps:$4 sm:$0xff]  }
 0x134   :  { %v664_v46 = vpack.c.bf16 %v656_v44, %v654_v36 }
 0x135   :  { %v665_v47 = vpack.c.bf16 %v657_v45, %v655_v41  ;;  %1156 = vmatpush1.bf16.msra.mxu0 %v2635_v8  ;;  %v2659_v8 = vld [vmem:[%s3670_s5 + $0x28] ss:$16 sps:$4 sm:$0xff]  }
 0x136   :  { %1115 = vmatpush1.bf16.msra.mxu1 %v2632_v7  ;;  %1157 = vmatprep.subr.bf16.mxu0 %v2643_v12  ;;  %v2656_v7 = vld [vmem:[%s3670_s5 + $0x20] ss:$16 sps:$4 sm:$0xff]   ;;  %v2665_v12 = vld [vmem:[%s3670_s5 + $0x48] ss:$16 sps:$4 sm:$0xff]  }
 0x137   :  { %850 = vmatprep.mubr.bf16.mxu0 %v665_v47  ;;  %1116 = vmatprep.subr.bf16.mxu1 %v2640_v10  ;;  %v2667_v10 = vld [vmem:[%s3670_s5 + $0x4c] ss:$16 sps:$4 sm:$0xff]  }
 0x138   :  { %851 = vmatmul.mubr.bf16.gmra.mrb[28].mxu0 %v664_v46 }
 0x139   :  { %1158 = vmatpush1.bf16.msra.mxu0 %v2641_v11  ;;  %1177 = vmatprep.mubr.bf16.mxu0 %v2843_v16  ;;  %v2662_v11 = vld [vmem:[%s3670_s5 + $0x40] ss:$16 sps:$4 sm:$0xff]   ;;  %v2671_v16 = vld [vmem:[%s3670_s5 + $0x68] ss:$16 sps:$4 sm:$0xff]  }
 0x13a   :  { %1117 = vmatpush1.bf16.msra.mxu1 %v2638_v9  ;;  %1159 = vmatprep.subr.bf16.mxu0 %v2649_v14  ;;  %v2664_v9 = vld [vmem:[%s3670_s5 + $0x44] ss:$16 sps:$4 sm:$0xff]   ;;  %v2673_v14 = vld [vmem:[%s3670_s5 + $0x6c] ss:$16 sps:$4 sm:$0xff]  }
 0x13b   :  { %1118 = vmatprep.subr.bf16.mxu1 %v2646_v13  ;;  %v2670_v13 = vld [vmem:[%s3670_s5 + $0x64] ss:$16 sps:$4 sm:$0xff]  }
 0x13d   :  { %1160 = vmatpush1.bf16.msra.mxu0 %v2647_v17  ;;  %v2676_v17 = vld [vmem:[%s3670_s5 + $0x84] ss:$16 sps:$4 sm:$0xff]  }
 0x13e   :  { %1119 = vmatpush1.bf16.msra.mxu1 %v2644_v15  ;;  %2066 = vmatprep.subr.bf16.mxu0 %v2655_v19  ;;  %v2668_v15 = vld [vmem:[%s3670_s5 + $0x60] ss:$16 sps:$4 sm:$0xff]  }
 0x13f   :  { %1984 = vmatprep.subr.bf16.mxu1 %v2652_v18  ;;  %v2679_v18 = vld [vmem:[%s3670_s5 + $0x8c] ss:$16 sps:$4 sm:$0xff]   ;;  %v2674_v19 = vld [vmem:[%s3670_s5 + $0x80] ss:$16 sps:$4 sm:$0xff]  }
 0x1f3   :  { %v2439_v20 = vpop.f32.mrb[16].mxu0 }
 0x1f4   :  { %v2440_v21 = vpop.f32.mrb[17].mxu0 }
 0x1f5   :  { %v2441_v22 = vadd.f32 %v2440_v21, %v2439_v20  ;;  %v2442_v23 = vpop.f32.mrb[18].mxu0  ;;  %v2677_v20 = vld [vmem:[%s3670_s5 + $0x88] ss:$16 sps:$4 sm:$0xff]   ;;  %v2682_v21 = vld [vmem:[%s3670_s5 + $0xa4] ss:$16 sps:$4 sm:$0xff]  }
 0x1f6   :  { %v2443_v24 = vpop.f32.mrb[19].mxu0 }
 0x1f7   :  { %v2444_v25 = vadd.f32 %v2443_v24, %v2442_v23  ;;  %v2680_v23 = vld [vmem:[%s3670_s5 + $0xa0] ss:$16 sps:$4 sm:$0xff]   ;;  %v2683_v24 = vld [vmem:[%s3670_s5 + $0xa8] ss:$16 sps:$4 sm:$0xff]  }
 0x1f9   :  { %v860_v26 = vadd.f32 %v2444_v25, %v2441_v22  ;;  %v2685_v22 = vld [vmem:[%s3670_s5 + $0xac] ss:$16 sps:$4 sm:$0xff]   ;;  %v2688_v25 = vld [vmem:[%s3670_s5 + $0xc4] ss:$16 sps:$4 sm:$0xff]  }
 0x1fb   :  { %v2445_v27 = vpop.f32.mrb[20].mxu0 }
 0x1fc   :  { %v2446_v28 = vpop.f32.mrb[21].mxu0 }
 0x1fd   :  { %v2447_v29 = vadd.f32 %v2446_v28, %v2445_v27  ;;  %v2448_v30 = vpop.f32.mrb[22].mxu0  ;;  %v2686_v27 = vld [vmem:[%s3670_s5 + $0xc0] ss:$16 sps:$4 sm:$0xff]   ;;  %v2689_v28 = vld [vmem:[%s3670_s5 + $0xc8] ss:$16 sps:$4 sm:$0xff]  }
 0x1fe   :  { %v2449_v31 = vpop.f32.mrb[23].mxu0 }
 0x1ff   :  { %v861_v32 = vadd.f32 %v2447_v29, %v860_v26  ;;  %v2450_v33 = vadd.f32 %v2449_v31, %v2448_v30  ;;  %v2691_v26 = vld [vmem:[%s3670_s5 + $0xcc] ss:$16 sps:$4 sm:$0xff]   ;;  %v2694_v29 = vld [vmem:[%s3670_s5 + $0xe4] ss:$16 sps:$4 sm:$0xff]   ;;  %v2692_v31 = vld [vmem:[%s3670_s5 + $0xe0] ss:$16 sps:$4 sm:$0xff]  }
 0x200   :  { %v2697_v30 = vld [vmem:[%s3670_s5 + $0xec] ss:$16 sps:$4 sm:$0xff]  }
 0x201   :  { %v862_v34 = vadd.f32 %v2450_v33, %v861_v32  ;;  %v2695_v32 = vld [vmem:[%s3670_s5 + $0xe8] ss:$16 sps:$4 sm:$0xff]   ;;  %v2700_v33 = vld [vmem:[%s3670_s5 + $0x104] ss:$16 sps:$4 sm:$0xff]  }
 0x203   :  { %v2451_v35 = vpop.f32.mrb[24].mxu0  ;;  %v863_v41 = vrot.slane %v862_v34, 4 }
 0x204   :  { %v2452_v36 = vpop.f32.mrb[25].mxu0 }
 0x205   :  { %v2453_v37 = vadd.f32 %v2452_v36, %v2451_v35  ;;  %v2454_v38 = vpop.f32.mrb[26].mxu0  ;;  %v864_v45 = vadd.f32 %v863_v41, %v862_v34  ;;  %v2703_v34 = vld [vmem:[%s3670_s5 + $0x10c] ss:$16 sps:$4 sm:$0xff]   ;;  %v2698_v35 = vld [vmem:[%s3670_s5 + $0x100] ss:$16 sps:$4 sm:$0xff]  }
 0x206   :  { %v2455_v39 = vpop.f32.mrb[27].mxu0  ;;  %v2701_v36 = vld [vmem:[%s3670_s5 + $0x108] ss:$16 sps:$4 sm:$0xff]   ;;  %v2712_v41 = vld [vmem:[%s3670_s5 + $0x144] ss:$16 sps:$4 sm:$0xff]  }
 0x207   :  { %v2456_v40 = vadd.f32 %v2455_v39, %v2454_v38  ;;  %v865_v51 = vrot.slane %v864_v45, 2  ;;  %v2709_v38 = vld [vmem:[%s3670_s5 + $0x12c] ss:$16 sps:$4 sm:$0xff]   ;;  %v2704_v39 = vld [vmem:[%s3670_s5 + $0x120] ss:$16 sps:$4 sm:$0xff]  }
 0x209   :  { %v869_v42 = vadd.f32 %v2456_v40, %v2453_v37  ;;  %v866_v54 = vadd.f32 %v865_v51, %v864_v45  ;;  %v2706_v37 = vld [vmem:[%s3670_s5 + $0x124] ss:$16 sps:$4 sm:$0xff]   ;;  %v2707_v40 = vld [vmem:[%s3670_s5 + $0x128] ss:$16 sps:$4 sm:$0xff]   ;;  %v2722_v51 = vld [vmem:[%s3670_s5 + $0x180] ss:$16 sps:$4 sm:$0xff]  }
 0x20a   :  { %v2718_v45 = vld [vmem:[%s3670_s5 + $0x164] ss:$16 sps:$4 sm:$0xff]  }
 0x20b   :  { %v2457_v43 = vpop.f32.mrb[28].mxu0  ;;  %v867_v57 = vrot.slane %v866_v54, 1 }
 0x20c   :  { %v2458_v44 = vpop.f32.mrb[29].mxu0 }
 0x20d   :  { %v2459_v46 = vadd.f32 %v2458_v44, %v2457_v43  ;;  %v2460_v47 = vpop.f32.mrb[30].mxu0  ;;  %v868_v60 = vadd.f32 %v867_v57, %v866_v54  ;;  %v2710_v43 = vld [vmem:[%s3670_s5 + $0x140] ss:$16 sps:$4 sm:$0xff]   ;;  %v2713_v44 = vld [vmem:[%s3670_s5 + $0x148] ss:$16 sps:$4 sm:$0xff]  }
 0x20e   :  { %v2461_v48 = vpop.f32.mrb[31].mxu0  ;;  %v2733_v54 = vld [vmem:[%s3670_s5 + $0x1ac] ss:$16 sps:$4 sm:$0xff]   ;;  %v2736_v57 = vld [vmem:[%s3670_s5 + $0x1c4] ss:$16 sps:$4 sm:$0xff]  }
 0x20f   :  { %v870_v49 = vadd.f32 %v2459_v46, %v869_v42  ;;  %v2462_v50 = vadd.f32 %v2461_v48, %v2460_v47  ;;  %v2715_v42 = vld [vmem:[%s3670_s5 + $0x14c] ss:$16 sps:$4 sm:$0xff]   ;;  %v2716_v47 = vld [vmem:[%s3670_s5 + $0x160] ss:$16 sps:$4 sm:$0xff]   ;;  %v2719_v48 = vld [vmem:[%s3670_s5 + $0x168] ss:$16 sps:$4 sm:$0xff]  }
 0x210   :  { %v2721_v46 = vld [vmem:[%s3670_s5 + $0x16c] ss:$16 sps:$4 sm:$0xff]  }
 0x211   :  { %v871_v52 = vadd.f32 %v2462_v50, %v870_v49  ;;  %v2724_v49 = vld [vmem:[%s3670_s5 + $0x184] ss:$16 sps:$4 sm:$0xff]   ;;  %v2727_v50 = vld [vmem:[%s3670_s5 + $0x18c] ss:$16 sps:$4 sm:$0xff]  }
 0x213   :  { %v872_v53 = vrot.slane %v871_v52, 4 }
 0x215   :  { %v873_v55 = vadd.f32 %v872_v53, %v871_v52  ;;  %v2725_v52 = vld [vmem:[%s3670_s5 + $0x188] ss:$16 sps:$4 sm:$0xff]   ;;  %v2730_v53 = vld [vmem:[%s3670_s5 + $0x1a4] ss:$16 sps:$4 sm:$0xff]  }
 0x217   :  { %v874_v56 = vrot.slane %v873_v55, 2 }
 0x219   :  { %v875_v58 = vadd.f32 %v874_v56, %v873_v55  ;;  %v2728_v55 = vld [vmem:[%s3670_s5 + $0x1a0] ss:$16 sps:$4 sm:$0xff]   ;;  %v2731_v56 = vld [vmem:[%s3670_s5 + $0x1a8] ss:$16 sps:$4 sm:$0xff]  }
 0x21b   :  { %v876_v59 = vrot.slane %v875_v58, 1 }
 0x21d   :  { %v877_v62 = vadd.f32 %v876_v59, %v875_v58  ;;  %v2739_v58 = vld [vmem:[%s3670_s5 + $0x1cc] ss:$16 sps:$4 sm:$0xff]   ;;  %v2734_v59 = vld [vmem:[%s3670_s5 + $0x1c0] ss:$16 sps:$4 sm:$0xff]  }
 0x21f   :  { %v881_v63 = vsel %vm880_vm0, %v877_v62, %v868_v60  ;;  %v2737_v60 = vld [vmem:[%s3670_s5 + $0x1c8] ss:$16 sps:$4 sm:$0xff]   ;;  %v2745_v62 = vld [vmem:[%s3670_s5 + $0x1ec] ss:$16 sps:$4 sm:$0xff]  }
 0x220   :  { %v883_v0 = vadd.f32 %v881_v63, %v859_v61  ;;  %v2742_v61 = vld [vmem:[%s3670_s5 + $0x1e4] ss:$16 sps:$4 sm:$0xff]   ;;  %v2740_v63 = vld [vmem:[%s3670_s5 + $0x1e0] ss:$16 sps:$4 sm:$0xff]  }
 0x222   :  { %884 = vst [vmem:[#allocation2] sm:$0x3] %v883_v0  ;;  %v2743_v0 = vld [vmem:[%s3670_s5 + $0x1e8] ss:$16 sps:$4 sm:$0xff]  }
 0x229   :  { %v888_v1 = vld [vmem:[#allocation2] sm:$0x3] }
 0x22a   :  { %v889_v4 = vpack.c.bf16 %v888_v1, %v888_v1  ;;  %v2748_v1 = vld [vmem:[%s3670_s5 + $0x204] ss:$16 sps:$4 sm:$0xff]  }
 0x22c   :  { %1137 = vmatmul.mubr.bf16.vlgmr.msra.gmra.mrb[16].mxu1 %v889_v4  ;;  %1178 = vmatmul.mubr.bf16.vlgmr.msra.gmra.mrb[32].mxu0 %v889_v4 }
 0x22d   :  { %1985 = vmatpush1.bf16.msra.mxu1 %v2650_v2  ;;  %2067 = vmatpush1.bf16.msra.mxu0 %v2653_v3  ;;  %v2751_v2 = vld [vmem:[%s3670_s5 + $0x20c] ss:$16 sps:$4 sm:$0xff]   ;;  %v924_v3 = vlaneseq }
 0x22e   :  { %1986 = vmatprep.subr.bf16.mxu1 %v2658_v5  ;;  %2068 = vmatprep.subr.bf16.mxu0 %v2661_v6  ;;  %v3449_v6 = vld [vmem:[%s3671_s4] sm:$0xf] }
 0x22f   :  { %v3443_v4 = vshrl.u32 %v924_v3, 7  ;;  %v2808_v3 = vld [vmem:[%s3670_s5 + $0x344] ss:$16 sps:$4 sm:$0xff]  }
 0x231   :  { %1987 = vmatpush1.bf16.msra.mxu1 %v2656_v7  ;;  %2069 = vmatpush1.bf16.msra.mxu0 %v2659_v8  ;;  %v926_v5 = vsub.s32 0, %v3443_v4  ;;  %v930_v7 = vsub.s32 1, %v3443_v4  ;;  %v938_v8 = vsub.s32 3, %v3443_v4 }
 0x232   :  { %1988 = vmatprep.subr.bf16.mxu1 %v2664_v9  ;;  %2070 = vmatprep.subr.bf16.mxu0 %v2667_v10 }
 0x233   :  { %v927_v9 = vrot.slane %v3449_v6, %v926_v5  ;;  %v931_v10 = vrot.slane %v3449_v6, %v930_v7 }
 0x235   :  { %1989 = vmatpush1.bf16.msra.mxu1 %v2662_v11  ;;  %2071 = vmatpush1.bf16.msra.mxu0 %v2665_v12  ;;  %v939_v11 = vrot.slane %v3449_v6, %v938_v8 }
 0x236   :  { %1990 = vmatprep.subr.bf16.mxu1 %v2670_v13  ;;  %2072 = vmatprep.subr.bf16.mxu0 %v2673_v14 }
 0x239   :  { %1991 = vmatpush1.bf16.msra.mxu1 %v2668_v15  ;;  %2073 = vmatpush1.bf16.msra.mxu0 %v2671_v16 }
 0x23a   :  { %1992 = vmatprep.subr.bf16.mxu1 %v2676_v17  ;;  %2074 = vmatprep.subr.bf16.mxu0 %v2679_v18 }
 0x23d   :  { %1993 = vmatpush1.bf16.msra.mxu1 %v2674_v19  ;;  %2075 = vmatpush1.bf16.msra.mxu0 %v2677_v20 }
 0x23e   :  { %1994 = vmatprep.subr.bf16.mxu1 %v2682_v21  ;;  %2076 = vmatprep.subr.bf16.mxu0 %v2685_v22 }
 0x241   :  { %1995 = vmatpush1.bf16.msra.mxu1 %v2680_v23  ;;  %2077 = vmatpush1.bf16.msra.mxu0 %v2683_v24 }
 0x242   :  { %1996 = vmatprep.subr.bf16.mxu1 %v2688_v25  ;;  %2078 = vmatprep.subr.bf16.mxu0 %v2691_v26 }
 0x245   :  { %1997 = vmatpush1.bf16.msra.mxu1 %v2686_v27  ;;  %2079 = vmatpush1.bf16.msra.mxu0 %v2689_v28  ;;  %v2746_v27 = vld [vmem:[%s3670_s5 + $0x200] ss:$16 sps:$4 sm:$0xff]   ;;  %v2749_v28 = vld [vmem:[%s3670_s5 + $0x208] ss:$16 sps:$4 sm:$0xff]  }
 0x246   :  { %1998 = vmatprep.subr.bf16.mxu1 %v2694_v29  ;;  %2080 = vmatprep.subr.bf16.mxu0 %v2697_v30  ;;  %v2754_v30 = vld [vmem:[%s3670_s5 + $0x224] ss:$16 sps:$4 sm:$0xff]  }
 0x249   :  { %1999 = vmatpush1.bf16.msra.mxu1 %v2692_v31  ;;  %2081 = vmatpush1.bf16.msra.mxu0 %v2695_v32  ;;  %v2757_v31 = vld [vmem:[%s3670_s5 + $0x22c] ss:$16 sps:$4 sm:$0xff]  }
 0x24a   :  { %2000 = vmatprep.subr.bf16.mxu1 %v2700_v33  ;;  %2082 = vmatprep.subr.bf16.mxu0 %v2703_v34  ;;  %v2752_v33 = vld [vmem:[%s3670_s5 + $0x220] ss:$16 sps:$4 sm:$0xff]   ;;  %v2755_v34 = vld [vmem:[%s3670_s5 + $0x228] ss:$16 sps:$4 sm:$0xff]  }
 0x24d   :  { %2001 = vmatpush1.bf16.msra.mxu1 %v2698_v35  ;;  %2083 = vmatpush1.bf16.msra.mxu0 %v2701_v36  ;;  %v2760_v35 = vld [vmem:[%s3670_s5 + $0x244] ss:$16 sps:$4 sm:$0xff]   ;;  %v2763_v36 = vld [vmem:[%s3670_s5 + $0x24c] ss:$16 sps:$4 sm:$0xff]  }
 0x24e   :  { %2002 = vmatprep.subr.bf16.mxu1 %v2706_v37  ;;  %2084 = vmatprep.subr.bf16.mxu0 %v2709_v38  ;;  %v2758_v37 = vld [vmem:[%s3670_s5 + $0x240] ss:$16 sps:$4 sm:$0xff]   ;;  %v2761_v38 = vld [vmem:[%s3670_s5 + $0x248] ss:$16 sps:$4 sm:$0xff]  }
 0x251   :  { %2003 = vmatpush1.bf16.msra.mxu1 %v2704_v39  ;;  %2085 = vmatpush1.bf16.msra.mxu0 %v2707_v40  ;;  %v2766_v39 = vld [vmem:[%s3670_s5 + $0x264] ss:$16 sps:$4 sm:$0xff]   ;;  %v2769_v40 = vld [vmem:[%s3670_s5 + $0x26c] ss:$16 sps:$4 sm:$0xff]  }
 0x252   :  { %2004 = vmatprep.subr.bf16.mxu1 %v2712_v41  ;;  %2086 = vmatprep.subr.bf16.mxu0 %v2715_v42  ;;  %v2764_v41 = vld [vmem:[%s3670_s5 + $0x260] ss:$16 sps:$4 sm:$0xff]   ;;  %v2767_v42 = vld [vmem:[%s3670_s5 + $0x268] ss:$16 sps:$4 sm:$0xff]  }
 0x255   :  { %2005 = vmatpush1.bf16.msra.mxu1 %v2710_v43  ;;  %2087 = vmatpush1.bf16.msra.mxu0 %v2713_v44  ;;  %v2772_v43 = vld [vmem:[%s3670_s5 + $0x284] ss:$16 sps:$4 sm:$0xff]   ;;  %v2775_v44 = vld [vmem:[%s3670_s5 + $0x28c] ss:$16 sps:$4 sm:$0xff]  }
 0x256   :  { %2006 = vmatprep.subr.bf16.mxu1 %v2718_v45  ;;  %2088 = vmatprep.subr.bf16.mxu0 %v2721_v46  ;;  %v2770_v45 = vld [vmem:[%s3670_s5 + $0x280] ss:$16 sps:$4 sm:$0xff]   ;;  %v2773_v46 = vld [vmem:[%s3670_s5 + $0x288] ss:$16 sps:$4 sm:$0xff]  }
 0x259   :  { %2007 = vmatpush1.bf16.msra.mxu1 %v2716_v47  ;;  %2089 = vmatpush1.bf16.msra.mxu0 %v2719_v48  ;;  %v2778_v47 = vld [vmem:[%s3670_s5 + $0x2a4] ss:$16 sps:$4 sm:$0xff]   ;;  %v2781_v48 = vld [vmem:[%s3670_s5 + $0x2ac] ss:$16 sps:$4 sm:$0xff]  }
 0x25a   :  { %2008 = vmatprep.subr.bf16.mxu1 %v2724_v49  ;;  %2090 = vmatprep.subr.bf16.mxu0 %v2727_v50  ;;  %v2776_v49 = vld [vmem:[%s3670_s5 + $0x2a0] ss:$16 sps:$4 sm:$0xff]   ;;  %v2779_v50 = vld [vmem:[%s3670_s5 + $0x2a8] ss:$16 sps:$4 sm:$0xff]  }
 0x25d   :  { %2009 = vmatpush1.bf16.msra.mxu1 %v2722_v51  ;;  %2091 = vmatpush1.bf16.msra.mxu0 %v2725_v52  ;;  %v2784_v51 = vld [vmem:[%s3670_s5 + $0x2c4] ss:$16 sps:$4 sm:$0xff]   ;;  %v2787_v52 = vld [vmem:[%s3670_s5 + $0x2cc] ss:$16 sps:$4 sm:$0xff]  }
 0x25e   :  { %2010 = vmatprep.subr.bf16.mxu1 %v2730_v53  ;;  %2092 = vmatprep.subr.bf16.mxu0 %v2733_v54  ;;  %v2782_v53 = vld [vmem:[%s3670_s5 + $0x2c0] ss:$16 sps:$4 sm:$0xff]   ;;  %v2785_v54 = vld [vmem:[%s3670_s5 + $0x2c8] ss:$16 sps:$4 sm:$0xff]  }
 0x261   :  { %2011 = vmatpush1.bf16.msra.mxu1 %v2728_v55  ;;  %2093 = vmatpush1.bf16.msra.mxu0 %v2731_v56  ;;  %v2790_v55 = vld [vmem:[%s3670_s5 + $0x2e4] ss:$16 sps:$4 sm:$0xff]   ;;  %v2793_v56 = vld [vmem:[%s3670_s5 + $0x2ec] ss:$16 sps:$4 sm:$0xff]  }
 0x262   :  { %2012 = vmatprep.subr.bf16.mxu1 %v2736_v57  ;;  %2094 = vmatprep.subr.bf16.mxu0 %v2739_v58  ;;  %v2788_v57 = vld [vmem:[%s3670_s5 + $0x2e0] ss:$16 sps:$4 sm:$0xff]   ;;  %v2791_v58 = vld [vmem:[%s3670_s5 + $0x2e8] ss:$16 sps:$4 sm:$0xff]  }
 0x265   :  { %2013 = vmatpush1.bf16.msra.mxu1 %v2734_v59  ;;  %2095 = vmatpush1.bf16.msra.mxu0 %v2737_v60  ;;  %v2796_v59 = vld [vmem:[%s3670_s5 + $0x304] ss:$16 sps:$4 sm:$0xff]   ;;  %v2799_v60 = vld [vmem:[%s3670_s5 + $0x30c] ss:$16 sps:$4 sm:$0xff]  }
 0x266   :  { %2014 = vmatprep.subr.bf16.mxu1 %v2742_v61  ;;  %2096 = vmatprep.subr.bf16.mxu0 %v2745_v62  ;;  %v2794_v61 = vld [vmem:[%s3670_s5 + $0x300] ss:$16 sps:$4 sm:$0xff]   ;;  %v2797_v62 = vld [vmem:[%s3670_s5 + $0x308] ss:$16 sps:$4 sm:$0xff]  }
 0x269   :  { %2015 = vmatpush1.bf16.msra.mxu1 %v2740_v63  ;;  %2097 = vmatpush1.bf16.msra.mxu0 %v2743_v0  ;;  %v2802_v63 = vld [vmem:[%s3670_s5 + $0x324] ss:$16 sps:$4 sm:$0xff]   ;;  %v2805_v0 = vld [vmem:[%s3670_s5 + $0x32c] ss:$16 sps:$4 sm:$0xff]  }
 0x26a   :  { %2025 = vmatprep.subr.bf16.mxu1 %v2748_v1  ;;  %2107 = vmatprep.subr.bf16.mxu0 %v2751_v2  ;;  %v2800_v1 = vld [vmem:[%s3670_s5 + $0x320] ss:$16 sps:$4 sm:$0xff]   ;;  %v2803_v2 = vld [vmem:[%s3670_s5 + $0x328] ss:$16 sps:$4 sm:$0xff]  }
 0x2ff   :  { %v1138_v12 = vpop.f32.mrb[16].mxu1  ;;  %v3462_v13 = vpop.f32.mrb[32].mxu0 }
 0x300   :  { %v1139_v14 = vadd.f32 %v1138_v12, %v927_v9  ;;  %v1140_v15 = vpop.f32.mrb[17].mxu1  ;;  %v1181_v16 = vpop.f32.mrb[33].mxu0  ;;  %v2811_v9 = vld [vmem:[%s3670_s5 + $0x34c] ss:$16 sps:$4 sm:$0xff]   ;;  %v2814_v12 = vld [vmem:[%s3670_s5 + $0x364] ss:$16 sps:$4 sm:$0xff]  }
 0x301   :  { %v1141_v17 = vadd.f32 %v1140_v15, %v931_v10  ;;  %v1182_v18 = vadd.f32 %v1181_v16, %v939_v11  ;;  %v1142_v19 = vpop.f32.mrb[18].mxu1  ;;  %v1183_v20 = vpop.f32.mrb[34].mxu0  ;;  %v2806_v10 = vld [vmem:[%s3670_s5 + $0x340] ss:$16 sps:$4 sm:$0xff]   ;;  %v2809_v11 = vld [vmem:[%s3670_s5 + $0x348] ss:$16 sps:$4 sm:$0xff]  }
 0x302   :  { %v1186_v21 = vmax.f32 %v1139_v14, 0.0  ;;  %v1143_v22 = vpop.f32.mrb[19].mxu1  ;;  %v1184_v23 = vpop.f32.mrb[35].mxu0  ;;  %v2817_v14 = vld [vmem:[%s3670_s5 + $0x36c] ss:$16 sps:$4 sm:$0xff]  }
 0x303   :  { %v1187_v24 = vmax.f32 %v1141_v17, 0.0  ;;  %v1189_v25 = vmax.f32 %v1182_v18, 0.0  ;;  %v2812_v15 = vld [vmem:[%s3670_s5 + $0x360] ss:$16 sps:$4 sm:$0xff]   ;;  %v2815_v16 = vld [vmem:[%s3670_s5 + $0x368] ss:$16 sps:$4 sm:$0xff]  }
 0x304   :  { %v1190_v29 = vpack.c.bf16 %v1186_v21, %v1186_v21  ;;  %v2820_v17 = vld [vmem:[%s3670_s5 + $0x384] ss:$16 sps:$4 sm:$0xff]   ;;  %v2823_v18 = vld [vmem:[%s3670_s5 + $0x38c] ss:$16 sps:$4 sm:$0xff]   ;;  %v2818_v19 = vld [vmem:[%s3670_s5 + $0x380] ss:$16 sps:$4 sm:$0xff]  }
 0x305   :  { %v1191_v26 = vpack.c.bf16 %v1187_v24, %v1187_v24  ;;  %v1193_v32 = vpack.c.bf16 %v1189_v25, %v1189_v25  ;;  %v2821_v20 = vld [vmem:[%s3670_s5 + $0x388] ss:$16 sps:$4 sm:$0xff]   ;;  %v934_v21 = vsub.s32 2, %v3443_v4  ;;  %v2826_v22 = vld [vmem:[%s3670_s5 + $0x3a4] ss:$16 sps:$4 sm:$0xff]  }
 0x306   :  { %v2829_v23 = vld [vmem:[%s3670_s5 + $0x3ac] ss:$16 sps:$4 sm:$0xff]   ;;  %v2824_v24 = vld [vmem:[%s3670_s5 + $0x3a0] ss:$16 sps:$4 sm:$0xff]   ;;  %v2827_v25 = vld [vmem:[%s3670_s5 + $0x3a8] ss:$16 sps:$4 sm:$0xff]  }
 0x307   :  { %2016 = vmatprep.mubr.bf16.mxu1 %v1191_v26  ;;  %2098 = vmatprep.mubr.bf16.mxu0 %v1191_v26  ;;  %v935_v26 = vrot.slane %v3449_v6, %v934_v21  ;;  %v2833_v6 = vld [vmem:[%s3670_s5 + $0x3c8] ss:$16 sps:$4 sm:$0xff]  }
 0x308   :  { %2017 = vmatmul.mubr.bf16.vlgmr.msra.gmra.mrb[20].mxu1 %v1190_v29  ;;  %2099 = vmatmul.mubr.bf16.vlgmr.msra.gmra.mrb[36].mxu0 %v1190_v29  ;;  %v2830_v29 = vld [vmem:[%s3670_s5 + $0x3c0] ss:$16 sps:$4 sm:$0xff]  }
 0x309   :  { %2026 = vmatpush1.bf16.msra.mxu1 %v2746_v27  ;;  %2108 = vmatpush1.bf16.msra.mxu0 %v2749_v28  ;;  %v2832_v27 = vld [vmem:[%s3670_s5 + $0x3c4] ss:$16 sps:$4 sm:$0xff]   ;;  %v2835_v28 = vld [vmem:[%s3670_s5 + $0x3cc] ss:$16 sps:$4 sm:$0xff]  }
 0x30a   :  { %2057 = vmatprep.mubr.bf16.mxu1 %v1193_v32  ;;  %2139 = vmatprep.mubr.bf16.mxu0 %v1193_v32  ;;  %v2841_v32 = vld [vmem:[%s3670_s5 + $0x3ec] ss:$16 sps:$4 sm:$0xff]  }
 0x30b   :  { %2027 = vmatprep.subr.bf16.mxu1 %v2754_v30  ;;  %2109 = vmatprep.subr.bf16.mxu0 %v2757_v31  ;;  %v1180_v30 = vadd.f32 %v3462_v13, %v935_v26  ;;  %v2838_v31 = vld [vmem:[%s3670_s5 + $0x3e4] ss:$16 sps:$4 sm:$0xff]   ;;  %v2839_v13 = vld [vmem:[%s3670_s5 + $0x3e8] ss:$16 sps:$4 sm:$0xff]  }
 0x30d   :  { %2028 = vmatpush1.bf16.msra.mxu1 %v2752_v33  ;;  %2110 = vmatpush1.bf16.msra.mxu0 %v2755_v34  ;;  %v2836_v33 = vld [vmem:[%s3670_s5 + $0x3e0] ss:$16 sps:$4 sm:$0xff]   ;;  %v1188_v34 = vmax.f32 %v1180_v30, 0.0 }
 0x30e   :  { %2029 = vmatprep.subr.bf16.mxu1 %v2760_v35  ;;  %2111 = vmatprep.subr.bf16.mxu0 %v2763_v36  ;;  %v1322_v36 = vld [vmem:[%s3672_s6] sm:$0xf] }
 0x30f   :  { %v1192_v35 = vpack.c.bf16 %v1188_v34, %v1188_v34 }
 0x311   :  { %2030 = vmatpush1.bf16.msra.mxu1 %v2758_v37  ;;  %2112 = vmatpush1.bf16.msra.mxu0 %v2761_v38  ;;  %v2844_v37 = vmov 1983009808  }
 0x312   :  { %2031 = vmatprep.subr.bf16.mxu1 %v2766_v39  ;;  %2113 = vmatprep.subr.bf16.mxu0 %v2769_v40  ;;  %v2155_v38 = vunpack.c.l.s4 %v2844_v37  ;;  %v1327_v39 = vrot.slane %v1322_v36, %v926_v5  ;;  %v1335_v40 = vrot.slane %v1322_v36, %v934_v21 }
 0x315   :  { %2032 = vmatpush1.bf16.msra.mxu1 %v2764_v41  ;;  %2114 = vmatpush1.bf16.msra.mxu0 %v2767_v42  ;;  %v1331_v41 = vrot.slane %v1322_v36, %v930_v7  ;;  %v2156_v42 = vunpack.c.0.s8 %v2155_v38 }
 0x316   :  { %2033 = vmatprep.subr.bf16.mxu1 %v2772_v43  ;;  %2115 = vmatprep.subr.bf16.mxu0 %v2775_v44  ;;  %v1339_v43 = vrot.slane %v1322_v36, %v938_v8 }
 0x319   :  { %2034 = vmatpush1.bf16.msra.mxu1 %v2770_v45  ;;  %2116 = vmatpush1.bf16.msra.mxu0 %v2773_v46 }
 0x31a   :  { %2035 = vmatprep.subr.bf16.mxu1 %v2778_v47  ;;  %2117 = vmatprep.subr.bf16.mxu0 %v2781_v48 }
 0x31d   :  { %2036 = vmatpush1.bf16.msra.mxu1 %v2776_v49  ;;  %2118 = vmatpush1.bf16.msra.mxu0 %v2779_v50 }
 0x31e   :  { %2037 = vmatprep.subr.bf16.mxu1 %v2784_v51  ;;  %2119 = vmatprep.subr.bf16.mxu0 %v2787_v52  ;;  %v2159_v51 = vsub.s32 %v2156_v42, %v3443_v4 }
 0x321   :  { %2038 = vmatpush1.bf16.msra.mxu1 %v2782_v53  ;;  %2120 = vmatpush1.bf16.msra.mxu0 %v2785_v54 }
 0x322   :  { %2039 = vmatprep.subr.bf16.mxu1 %v2790_v55  ;;  %2121 = vmatprep.subr.bf16.mxu0 %v2793_v56 }
 0x325   :  { %2040 = vmatpush1.bf16.msra.mxu1 %v2788_v57  ;;  %2122 = vmatpush1.bf16.msra.mxu0 %v2791_v58 }
 0x326   :  { %2041 = vmatprep.subr.bf16.mxu1 %v2796_v59  ;;  %2123 = vmatprep.subr.bf16.mxu0 %v2799_v60 }
 0x329   :  { %2042 = vmatpush1.bf16.msra.mxu1 %v2794_v61  ;;  %2124 = vmatpush1.bf16.msra.mxu0 %v2797_v62 }
 0x32a   :  { %2043 = vmatprep.subr.bf16.mxu1 %v2802_v63  ;;  %2125 = vmatprep.subr.bf16.mxu0 %v2805_v0 }
 0x32d   :  { %2044 = vmatpush1.bf16.msra.mxu1 %v2800_v1  ;;  %2126 = vmatpush1.bf16.msra.mxu0 %v2803_v2 }
 0x32e   :  { %2045 = vmatprep.subr.bf16.mxu1 %v2808_v3  ;;  %2127 = vmatprep.subr.bf16.mxu0 %v2811_v9 }
 0x331   :  { %2046 = vmatpush1.bf16.msra.mxu1 %v2806_v10  ;;  %2128 = vmatpush1.bf16.msra.mxu0 %v2809_v11 }
 0x332   :  { %2047 = vmatprep.subr.bf16.mxu1 %v2814_v12  ;;  %2129 = vmatprep.subr.bf16.mxu0 %v2817_v14 }
 0x335   :  { %2048 = vmatpush1.bf16.msra.mxu1 %v2812_v15  ;;  %2130 = vmatpush1.bf16.msra.mxu0 %v2815_v16 }
 0x336   :  { %2049 = vmatprep.subr.bf16.mxu1 %v2820_v17  ;;  %2131 = vmatprep.subr.bf16.mxu0 %v2823_v18 }
 0x339   :  { %2050 = vmatpush1.bf16.msra.mxu1 %v2818_v19  ;;  %2132 = vmatpush1.bf16.msra.mxu0 %v2821_v20 }
 0x33a   :  { %2051 = vmatprep.subr.bf16.mxu1 %v2826_v22  ;;  %2133 = vmatprep.subr.bf16.mxu0 %v2829_v23 }
 0x33d   :  { %2052 = vmatpush1.bf16.msra.mxu1 %v2824_v24  ;;  %2134 = vmatpush1.bf16.msra.mxu0 %v2827_v25 }
 0x33e   :  { %2053 = vmatprep.subr.bf16.mxu1 %v2832_v27  ;;  %2135 = vmatprep.subr.bf16.mxu0 %v2835_v28 }
 0x341   :  { %2054 = vmatpush1.bf16.msra.mxu1 %v2830_v29  ;;  %2136 = vmatpush1.bf16.msra.mxu0 %v2833_v6 }
 0x342   :  { %2055 = vmatprep.subr.bf16.mxu1 %v2838_v31  ;;  %2137 = vmatprep.subr.bf16.mxu0 %v2841_v32 }
 0x345   :  { %2056 = vmatpush1.bf16.msra.mxu1 %v2836_v33  ;;  %2138 = vmatpush1.bf16.msra.mxu0 %v2839_v13 }
 0x348   :  { %2058 = vmatmul.mubr.bf16.vlgmr.msra.gmra.mrb[20].mxu1 %v1192_v35  ;;  %2140 = vmatmul.mubr.bf16.vlgmr.msra.gmra.mrb[36].mxu0 %v1192_v35 }
 0x41b   :  { %v2059_v44 = vpop.f32.mrb[20].mxu1  ;;  %v2141_v45 = vpop.f32.mrb[36].mxu0 }
 0x41c   :  { %v2463_v46 = vadd.f32 %v2059_v44, %v1327_v39  ;;  %v2465_v47 = vadd.f32 %v2141_v45, %v1335_v40  ;;  %v2061_v48 = vpop.f32.mrb[21].mxu1  ;;  %v2143_v49 = vpop.f32.mrb[37].mxu0 }
 0x41d   :  { %v2464_v50 = vadd.f32 %v2061_v48, %v1331_v41  ;;  %v2466_v52 = vadd.f32 %v2143_v49, %v1339_v43  ;;  %v2063_v53 = vpop.f32.mrb[22].mxu1  ;;  %v2145_v5 = vpop.f32.mrb[38].mxu0 }
 0x41e   :  { %v2064_v54 = vpop.f32.mrb[23].mxu1  ;;  %v2146_v55 = vpop.f32.mrb[39].mxu0 }
 0x41f   :  { %v2152_v56 = vcombine.low %v2463_v46, %v2464_v50  ;;  %v2153_v7 = vcombine.low %v2465_v47, %v2466_v52 }
 0x421   :  { %v2160_v57 = vrot.slane %v2152_v56, %v2159_v51  ;;  %v2167_v58 = vrot.slane %v2153_v7, %v2159_v51 }
 0x423   :  { %v2168_v59 = vcombine.low %v2160_v57, %v2167_v58 }
 0x425   :  { %2170 = vst [vmem:[%s3673_s7] sm:$0xff] %v2168_v59 }

</bundles_post_ra>
